<compile_context>
chip_gen: v6e
topology: v6e:2x2x1
jax: 0.10.0
libtpu: 0.0.40
codegen_flags: <defaults>
</compile_context>

<pallas_src>
import functools
import math

import jax
import jax.numpy as jnp
from jax.experimental import pallas as pl
from jax.experimental.pallas import tpu as pltpu


def _mean2px_conv_kernel(x_ref, w_ref, b_ref, o_ref, pad_ref, *,
                         H, W, C_in, C_out, P, BLK):
    """One grid step == one (ph, pw) patch position, ganged over BLK batch images.

    x_ref  : (BLK, H, W, C_in)        channels-last patch block
    w_ref  : (9, C_in, C_out)         conv taps, ordered kh*3 + kw
    b_ref  : (1, C_out)
    o_ref  : (BLK*H*W, C_out)         rows ordered (b, h, w)
    pad_ref: (BLK, H+2, W+2, C_in)    f32 VMEM scratch holding the padded patches
    """
    f32 = jnp.float32
    i = pl.program_id(0)  # patch-row index (ph)
    j = pl.program_id(1)  # patch-col index (pw)

    x = x_ref[...].astype(f32)  # (BLK, H, W, C_in)

    # Pads that would fall outside the full image are zeroed.  The masks depend
    # only on (i, j), so they are shared by the whole ganged block.
    top_m = jnp.where(i == 0, 0.0, 1.0).astype(f32)
    bot_m = jnp.where(i == P - 1, 0.0, 1.0).astype(f32)
    left_m = jnp.where(j == 0, 0.0, 1.0).astype(f32)
    right_m = jnp.where(j == P - 1, 0.0, 1.0).astype(f32)

    # Edge pads: mean of the two outermost rows / cols; corners copy the corner px.
    pad_top = (x[:, 0] + x[:, 1]) * (0.5 * top_m)                     # (BLK, W, C_in)
    pad_down = (x[:, H - 2] + x[:, H - 1]) * (0.5 * bot_m)            # (BLK, W, C_in)
    pad_left = (x[:, :, 0] + x[:, :, 1]) * (0.5 * left_m)             # (BLK, H, C_in)
    pad_right = (x[:, :, W - 2] + x[:, :, W - 1]) * (0.5 * right_m)   # (BLK, H, C_in)
    c_tl = x[:, 0, 0] * (top_m * left_m)                              # (BLK, C_in)
    c_tr = x[:, 0, W - 1] * (top_m * right_m)
    c_bl = x[:, H - 1, 0] * (bot_m * left_m)
    c_br = x[:, H - 1, W - 1] * (bot_m * right_m)

    # Materialise the mean-2px padded patch block once in VMEM scratch.
    pad_ref[:, 1:H + 1, 1:W + 1, :] = x
    pad_ref[:, 0, 1:W + 1, :] = pad_top
    pad_ref[:, H + 1, 1:W + 1, :] = pad_down
    pad_ref[:, 1:H + 1, 0, :] = pad_left
    pad_ref[:, 1:H + 1, W + 1, :] = pad_right
    pad_ref[:, 0, 0, :] = c_tl
    pad_ref[:, 0, W + 1, :] = c_tr
    pad_ref[:, H + 1, 0, :] = c_bl
    pad_ref[:, H + 1, W + 1, :] = c_br

    # 3x3 VALID conv over the padded block == 9 whole-block matmuls, f32 accumulate.
    M = BLK * H * W
    w = w_ref[...].astype(f32)  # (9, C_in, C_out), resident across the grid
    acc = jnp.zeros((M, C_out), f32)
    for kh in range(3):
        for kw in range(3):
            tap = pad_ref[:, kh:kh + H, kw:kw + W, :].reshape(M, C_in)
            acc = acc + jnp.dot(tap, w[kh * 3 + kw],
                                preferred_element_type=f32)

    # Single bulk store (bias broadcast over the C_out lanes).
    o_ref[...] = (acc + b_ref[...].astype(f32)).astype(o_ref.dtype)


def mean2px_conv(x, weight, bias, num_patches):
    """x: (B, C_in, P*H, P*W) NCHW.  weight: (C_out, C_in, 3, 3).  bias: (C_out,)."""
    B, C_in, HH, WW = x.shape
    P = num_patches
    H, W = HH // P, WW // P
    C_out = weight.shape[0]
    M = B * H * W

    # Glue: NCHW -> (ph, pw, B, H, W, C) so each grid step sees ALL batch patches
    # sharing one (ph, pw) position as a contiguous block.
    x_cl = (x.reshape(B, C_in, P, H, P, W)
             .transpose(2, 4, 0, 3, 5, 1)
             .reshape(P * P * B, H, W, C_in))
    w9 = jnp.transpose(weight, (2, 3, 1, 0)).reshape(9, C_in, C_out)  # (kh*3+kw, Ci, Co)
    b2 = bias.reshape(1, C_out)

    kernel = functools.partial(_mean2px_conv_kernel,
                               H=H, W=W, C_in=C_in, C_out=C_out, P=P, BLK=B)

    out_flat = pl.pallas_call(
        kernel,
        out_shape=jax.ShapeDtypeStruct((P * P * M, C_out), x.dtype),
        grid_spec=pltpu.PrefetchScalarGridSpec(
            num_scalar_prefetch=0,
            grid=(P, P),
            in_specs=[
                pl.BlockSpec((B, H, W, C_in), lambda i, j: (i * P + j, 0, 0, 0)),
                pl.BlockSpec((9, C_in, C_out), lambda i, j: (0, 0, 0)),
                pl.BlockSpec((1, C_out), lambda i, j: (0, 0)),
            ],
            out_specs=pl.BlockSpec((M, C_out), lambda i, j: (i * P + j, 0)),
            scratch_shapes=[pltpu.VMEM((B, H + 2, W + 2, C_in), jnp.float32)],
        ),
        compiler_params=pltpu.CompilerParams(
            dimension_semantics=("parallel", "parallel")),
    )(x_cl, w9, b2)

    # Glue: (ph, pw, b, h, w, c) -> NCHW.
    out = (out_flat.reshape(P, P, B, H, W, C_out)
                   .transpose(2, 5, 0, 3, 1, 4)
                   .reshape(B, C_out, P * H, P * W))
    return out
    # TODO(synk): a lane-dense (C_out, B*H*W) output presentation (one unmasked
    # (8,128) vst) would need an in-kernel transpose of the accumulator; kept the
    # simpler bulk (B*H*W, C_out) store since the HBM writeback is dense either way.


def ref_forward(x, weight, bias, P):
    """Pure-JAX mirror of the PyTorch forward (used only to validate)."""
    B, C, HH, WW = x.shape
    H, W = HH // P, WW // P
    xp = x.reshape(B, C, P, H, P, W).transpose(0, 2, 4, 1, 3, 5)  # (B, ph, pw, C, H, W)

    pad_top = xp[..., :2, :].mean(axis=-2, keepdims=True)
    pad_top = pad_top.at[:, 0].set(0.0)
    pad_down = xp[..., -2:, :].mean(axis=-2, keepdims=True)
    pad_down = pad_down.at[:, -1].set(0.0)
    pad_left = xp[..., :, :2].mean(axis=-1, keepdims=True)
    pad_left = pad_left.at[:, :, 0].set(0.0)
    pad_right = xp[..., :, -2:].mean(axis=-1, keepdims=True)
    pad_right = pad_right.at[:, :, -1].set(0.0)

    tl = xp[..., 0:1, 0:1]
    tl = tl.at[:, 0].set(0.0).at[:, :, 0].set(0.0)
    tr = xp[..., 0:1, -1:]
    tr = tr.at[:, 0].set(0.0).at[:, :, -1].set(0.0)
    bl = xp[..., -1:, 0:1]
    bl = bl.at[:, -1].set(0.0).at[:, :, 0].set(0.0)
    br = xp[..., -1:, -1:]
    br = br.at[:, -1].set(0.0).at[:, :, -1].set(0.0)

    top = jnp.concatenate([tl, pad_top, tr], axis=-1)
    bot = jnp.concatenate([bl, pad_down, br], axis=-1)
    mid = jnp.concatenate([pad_left, xp, pad_right], axis=-1)
    full = jnp.concatenate([top, mid, bot], axis=-2)              # (B, ph, pw, C, H+2, W+2)
    full = full.reshape(B * P * P, C, H + 2, W + 2)

    out = jax.lax.conv_general_dilated(
        full, weight, (1, 1), "VALID",
        dimension_numbers=("NCHW", "OIHW", "NCHW"),
        precision=jax.lax.Precision.HIGHEST)
    out = out + bias.reshape(1, -1, 1, 1)
    Co = weight.shape[0]
    out = (out.reshape(B, P, P, Co, H, W)
              .transpose(0, 3, 1, 4, 2, 5)
              .reshape(B, Co, P * H, P * W))
    return out


if __name__ == "__main__":
    B, C_in, C_out, P, H, W = 2, 4, 8, 2, 8, 8

    key = jax.random.PRNGKey(0)
    kx, kw_, kb = jax.random.split(key, 3)
    x = jax.random.normal(kx, (B, C_in, P * H, P * W), dtype=jnp.float32)

    # Deterministic Conv2d(C_in, C_out, 3) parameters (Kaiming-uniform-like bounds).
    fan_in = C_in * 3 * 3
    bound = 1.0 / math.sqrt(fan_in)
    weight = jax.random.uniform(kw_, (C_out, C_in, 3, 3), jnp.float32, -bound, bound)
    bias = jax.random.uniform(kb, (C_out,), jnp.float32, -bound, bound)

    out = jax.block_until_ready(mean2px_conv(x, weight, bias, P))
    ref = jax.block_until_ready(ref_forward(x, weight, bias, P))

    assert out.shape == ref.shape == (B, C_out, P * H, P * W)
    max_err = float(jnp.max(jnp.abs(out - ref)))
    if max_err > 1e-2:
        raise RuntimeError(f"kernel/reference mismatch, max abs err = {max_err}")
    print("KERNEL_OK")
</pallas_src>

<mosaic_0001>
module attributes {stable_mosaic.version = 11 : i64} {
  func.func @_mean2px_conv_kernel(%arg0: i32, %arg1: i32, %arg2: memref<2x8x8x4xf32, #tpu.memory_space<vmem>>, %arg3: memref<9x4x8xf32, #tpu.memory_space<vmem>>, %arg4: memref<1x8xf32, #tpu.memory_space<vmem>>, %arg5: memref<128x8xf32, #tpu.memory_space<vmem>>, %arg6: memref<2x10x10x4xf32, #tpu.memory_space<vmem>>) attributes {dimension_semantics = [#tpu.dimension_semantics<parallel>, #tpu.dimension_semantics<parallel>], iteration_bounds = array<i64: 2, 2>, scalar_prefetch = 0 : i64, scratch_operands = 1 : i64, tpu.core_type = #tpu.core_type<tc>, window_params = [{transform_indices = @transform_0, window_bounds = array<i64: 2, 8, 8, 4>}, {pipeline_mode = #tpu.pipeline_mode<synchronous>, transform_indices = @transform_1, window_bounds = array<i64: 9, 4, 8>}, {pipeline_mode = #tpu.pipeline_mode<synchronous>, transform_indices = @transform_2, window_bounds = array<i64: 1, 8>}, {transform_indices = @transform_3, window_bounds = array<i64: 128, 8>}]} {
    %c0 = arith.constant 0 : index
    %c0_0 = arith.constant 0 : index
    %c0_1 = arith.constant 0 : index
    %c0_2 = arith.constant 0 : index
    %0 = vector.load %arg2[%c0, %c0_0, %c0_1, %c0_2] : memref<2x8x8x4xf32, #tpu.memory_space<vmem>>, vector<2x8x8x4xf32>
    %c0_i32 = arith.constant 0 : i32
    %1 = arith.cmpi eq, %arg0, %c0_i32 : i32
    %cst = arith.constant 0.000000e+00 : f32
    %cst_3 = arith.constant 1.000000e+00 : f32
    %2 = arith.select %1, %cst, %cst_3 : f32
    %c1_i32 = arith.constant 1 : i32
    %3 = arith.cmpi eq, %arg0, %c1_i32 : i32
    %cst_4 = arith.constant 0.000000e+00 : f32
    %cst_5 = arith.constant 1.000000e+00 : f32
    %4 = arith.select %3, %cst_4, %cst_5 : f32
    %c0_i32_6 = arith.constant 0 : i32
    %5 = arith.cmpi eq, %arg1, %c0_i32_6 : i32
    %cst_7 = arith.constant 0.000000e+00 : f32
    %cst_8 = arith.constant 1.000000e+00 : f32
    %6 = arith.select %5, %cst_7, %cst_8 : f32
    %c1_i32_9 = arith.constant 1 : i32
    %7 = arith.cmpi eq, %arg1, %c1_i32_9 : i32
    %cst_10 = arith.constant 0.000000e+00 : f32
    %cst_11 = arith.constant 1.000000e+00 : f32
    %8 = arith.select %7, %cst_10, %cst_11 : f32
    %9 = vector.extract_strided_slice %0 {offsets = [0, 0, 0, 0], sizes = [2, 1, 8, 4], strides = [1, 1, 1, 1]} : vector<2x8x8x4xf32> to vector<2x1x8x4xf32>
    %10 = vector.shape_cast %9 : vector<2x1x8x4xf32> to vector<2x8x4xf32>
    %11 = vector.extract_strided_slice %0 {offsets = [0, 1, 0, 0], sizes = [2, 1, 8, 4], strides = [1, 1, 1, 1]} : vector<2x8x8x4xf32> to vector<2x1x8x4xf32>
    %12 = vector.shape_cast %11 : vector<2x1x8x4xf32> to vector<2x8x4xf32>
    %13 = arith.addf %10, %12 : vector<2x8x4xf32>
    %cst_12 = arith.constant 5.000000e-01 : f32
    %14 = arith.mulf %cst_12, %2 : f32
    %15 = vector.broadcast %14 : f32 to vector<2x8x4xf32>
    %16 = arith.mulf %13, %15 : vector<2x8x4xf32>
    %17 = vector.extract_strided_slice %0 {offsets = [0, 6, 0, 0], sizes = [2, 1, 8, 4], strides = [1, 1, 1, 1]} : vector<2x8x8x4xf32> to vector<2x1x8x4xf32>
    %18 = vector.shape_cast %17 : vector<2x1x8x4xf32> to vector<2x8x4xf32>
    %19 = vector.extract_strided_slice %0 {offsets = [0, 7, 0, 0], sizes = [2, 1, 8, 4], strides = [1, 1, 1, 1]} : vector<2x8x8x4xf32> to vector<2x1x8x4xf32>
    %20 = vector.shape_cast %19 : vector<2x1x8x4xf32> to vector<2x8x4xf32>
    %21 = arith.addf %18, %20 : vector<2x8x4xf32>
    %cst_13 = arith.constant 5.000000e-01 : f32
    %22 = arith.mulf %cst_13, %4 : f32
    %23 = vector.broadcast %22 : f32 to vector<2x8x4xf32>
    %24 = arith.mulf %21, %23 : vector<2x8x4xf32>
    %25 = vector.extract_strided_slice %0 {offsets = [0, 0, 0, 0], sizes = [2, 8, 1, 4], strides = [1, 1, 1, 1]} : vector<2x8x8x4xf32> to vector<2x8x1x4xf32>
    %26 = vector.shape_cast %25 : vector<2x8x1x4xf32> to vector<2x8x4xf32>
    %27 = vector.extract_strided_slice %0 {offsets = [0, 0, 1, 0], sizes = [2, 8, 1, 4], strides = [1, 1, 1, 1]} : vector<2x8x8x4xf32> to vector<2x8x1x4xf32>
    %28 = vector.shape_cast %27 : vector<2x8x1x4xf32> to vector<2x8x4xf32>
    %29 = arith.addf %26, %28 : vector<2x8x4xf32>
    %cst_14 = arith.constant 5.000000e-01 : f32
    %30 = arith.mulf %cst_14, %6 : f32
    %31 = vector.broadcast %30 : f32 to vector<2x8x4xf32>
    %32 = arith.mulf %29, %31 : vector<2x8x4xf32>
    %33 = vector.extract_strided_slice %0 {offsets = [0, 0, 6, 0], sizes = [2, 8, 1, 4], strides = [1, 1, 1, 1]} : vector<2x8x8x4xf32> to vector<2x8x1x4xf32>
    %34 = vector.shape_cast %33 : vector<2x8x1x4xf32> to vector<2x8x4xf32>
    %35 = vector.extract_strided_slice %0 {offsets = [0, 0, 7, 0], sizes = [2, 8, 1, 4], strides = [1, 1, 1, 1]} : vector<2x8x8x4xf32> to vector<2x8x1x4xf32>
    %36 = vector.shape_cast %35 : vector<2x8x1x4xf32> to vector<2x8x4xf32>
    %37 = arith.addf %34, %36 : vector<2x8x4xf32>
    %cst_15 = arith.constant 5.000000e-01 : f32
    %38 = arith.mulf %cst_15, %8 : f32
    %39 = vector.broadcast %38 : f32 to vector<2x8x4xf32>
    %40 = arith.mulf %37, %39 : vector<2x8x4xf32>
    %41 = vector.extract_strided_slice %0 {offsets = [0, 0, 0, 0], sizes = [2, 1, 1, 4], strides = [1, 1, 1, 1]} : vector<2x8x8x4xf32> to vector<2x1x1x4xf32>
    %42 = vector.shape_cast %41 : vector<2x1x1x4xf32> to vector<2x4xf32>
    %43 = arith.mulf %2, %6 : f32
    %44 = vector.broadcast %43 : f32 to vector<2x4xf32>
    %45 = arith.mulf %42, %44 : vector<2x4xf32>
    %46 = vector.extract_strided_slice %0 {offsets = [0, 0, 7, 0], sizes = [2, 1, 1, 4], strides = [1, 1, 1, 1]} : vector<2x8x8x4xf32> to vector<2x1x1x4xf32>
    %47 = vector.shape_cast %46 : vector<2x1x1x4xf32> to vector<2x4xf32>
    %48 = arith.mulf %2, %8 : f32
    %49 = vector.broadcast %48 : f32 to vector<2x4xf32>
    %50 = arith.mulf %47, %49 : vector<2x4xf32>
    %51 = vector.extract_strided_slice %0 {offsets = [0, 7, 0, 0], sizes = [2, 1, 1, 4], strides = [1, 1, 1, 1]} : vector<2x8x8x4xf32> to vector<2x1x1x4xf32>
    %52 = vector.shape_cast %51 : vector<2x1x1x4xf32> to vector<2x4xf32>
    %53 = arith.mulf %4, %6 : f32
    %54 = vector.broadcast %53 : f32 to vector<2x4xf32>
    %55 = arith.mulf %52, %54 : vector<2x4xf32>
    %56 = vector.extract_strided_slice %0 {offsets = [0, 7, 7, 0], sizes = [2, 1, 1, 4], strides = [1, 1, 1, 1]} : vector<2x8x8x4xf32> to vector<2x1x1x4xf32>
    %57 = vector.shape_cast %56 : vector<2x1x1x4xf32> to vector<2x4xf32>
    %58 = arith.mulf %4, %8 : f32
    %59 = vector.broadcast %58 : f32 to vector<2x4xf32>
    %60 = arith.mulf %57, %59 : vector<2x4xf32>
    %c0_16 = arith.constant 0 : index
    %c1 = arith.constant 1 : index
    %c1_17 = arith.constant 1 : index
    %c0_18 = arith.constant 0 : index
    %61 = vector.load %arg6[%c0_16, %c1, %c1_17, %c0_18] : memref<2x10x10x4xf32, #tpu.memory_space<vmem>>, vector<2x8x8x4xf32>
    tpu.vector_store %arg6[%c0_16, %c1, %c1_17, %c0_18], %0 {strides = array<i32>} : memref<2x10x10x4xf32, #tpu.memory_space<vmem>>, vector<2x8x8x4xf32>,
    %c0_19 = arith.constant 0 : index
    %c0_20 = arith.constant 0 : index
    %c1_21 = arith.constant 1 : index
    %c0_22 = arith.constant 0 : index
    %62 = vector.load %arg6[%c0_19, %c0_20, %c1_21, %c0_22] : memref<2x10x10x4xf32, #tpu.memory_space<vmem>>, vector<2x1x8x4xf32>
    %63 = vector.shape_cast %62 : vector<2x1x8x4xf32> to vector<2x8x4xf32>
    %64 = vector.shape_cast %16 : vector<2x8x4xf32> to vector<2x1x8x4xf32>
    tpu.vector_store %arg6[%c0_19, %c0_20, %c1_21, %c0_22], %64 {strides = array<i32>} : memref<2x10x10x4xf32, #tpu.memory_space<vmem>>, vector<2x1x8x4xf32>,
    %c0_23 = arith.constant 0 : index
    %c9 = arith.constant 9 : index
    %c1_24 = arith.constant 1 : index
    %c0_25 = arith.constant 0 : index
    %65 = vector.load %arg6[%c0_23, %c9, %c1_24, %c0_25] : memref<2x10x10x4xf32, #tpu.memory_space<vmem>>, vector<2x1x8x4xf32>
    %66 = vector.shape_cast %65 : vector<2x1x8x4xf32> to vector<2x8x4xf32>
    %67 = vector.shape_cast %24 : vector<2x8x4xf32> to vector<2x1x8x4xf32>
    tpu.vector_store %arg6[%c0_23, %c9, %c1_24, %c0_25], %67 {strides = array<i32>} : memref<2x10x10x4xf32, #tpu.memory_space<vmem>>, vector<2x1x8x4xf32>,
    %c0_26 = arith.constant 0 : index
    %c1_27 = arith.constant 1 : index
    %c0_28 = arith.constant 0 : index
    %c0_29 = arith.constant 0 : index
    %68 = vector.load %arg6[%c0_26, %c1_27, %c0_28, %c0_29] : memref<2x10x10x4xf32, #tpu.memory_space<vmem>>, vector<2x8x1x4xf32>
    %69 = vector.shape_cast %68 : vector<2x8x1x4xf32> to vector<2x8x4xf32>
    %70 = vector.shape_cast %32 : vector<2x8x4xf32> to vector<2x8x1x4xf32>
    tpu.vector_store %arg6[%c0_26, %c1_27, %c0_28, %c0_29], %70 {strides = array<i32>} : memref<2x10x10x4xf32, #tpu.memory_space<vmem>>, vector<2x8x1x4xf32>,
    %c0_30 = arith.constant 0 : index
    %c1_31 = arith.constant 1 : index
    %c9_32 = arith.constant 9 : index
    %c0_33 = arith.constant 0 : index
    %71 = vector.load %arg6[%c0_30, %c1_31, %c9_32, %c0_33] : memref<2x10x10x4xf32, #tpu.memory_space<vmem>>, vector<2x8x1x4xf32>
    %72 = vector.shape_cast %71 : vector<2x8x1x4xf32> to vector<2x8x4xf32>
    %73 = vector.shape_cast %40 : vector<2x8x4xf32> to vector<2x8x1x4xf32>
    tpu.vector_store %arg6[%c0_30, %c1_31, %c9_32, %c0_33], %73 {strides = array<i32>} : memref<2x10x10x4xf32, #tpu.memory_space<vmem>>, vector<2x8x1x4xf32>,
    %c0_34 = arith.constant 0 : index
    %c0_35 = arith.constant 0 : index
    %c0_36 = arith.constant 0 : index
    %c0_37 = arith.constant 0 : index
    %74 = vector.load %arg6[%c0_34, %c0_35, %c0_36, %c0_37] : memref<2x10x10x4xf32, #tpu.memory_space<vmem>>, vector<2x1x1x4xf32>
    %75 = vector.shape_cast %74 : vector<2x1x1x4xf32> to vector<2x4xf32>
    %76 = vector.shape_cast %45 : vector<2x4xf32> to vector<2x1x1x4xf32>
    tpu.vector_store %arg6[%c0_34, %c0_35, %c0_36, %c0_37], %76 {strides = array<i32>} : memref<2x10x10x4xf32, #tpu.memory_space<vmem>>, vector<2x1x1x4xf32>,
    %c0_38 = arith.constant 0 : index
    %c0_39 = arith.constant 0 : index
    %c9_40 = arith.constant 9 : index
    %c0_41 = arith.constant 0 : index
    %77 = vector.load %arg6[%c0_38, %c0_39, %c9_40, %c0_41] : memref<2x10x10x4xf32, #tpu.memory_space<vmem>>, vector<2x1x1x4xf32>
    %78 = vector.shape_cast %77 : vector<2x1x1x4xf32> to vector<2x4xf32>
    %79 = vector.shape_cast %50 : vector<2x4xf32> to vector<2x1x1x4xf32>
    tpu.vector_store %arg6[%c0_38, %c0_39, %c9_40, %c0_41], %79 {strides = array<i32>} : memref<2x10x10x4xf32, #tpu.memory_space<vmem>>, vector<2x1x1x4xf32>,
    %c0_42 = arith.constant 0 : index
    %c9_43 = arith.constant 9 : index
    %c0_44 = arith.constant 0 : index
    %c0_45 = arith.constant 0 : index
    %80 = vector.load %arg6[%c0_42, %c9_43, %c0_44, %c0_45] : memref<2x10x10x4xf32, #tpu.memory_space<vmem>>, vector<2x1x1x4xf32>
    %81 = vector.shape_cast %80 : vector<2x1x1x4xf32> to vector<2x4xf32>
    %82 = vector.shape_cast %55 : vector<2x4xf32> to vector<2x1x1x4xf32>
    tpu.vector_store %arg6[%c0_42, %c9_43, %c0_44, %c0_45], %82 {strides = array<i32>} : memref<2x10x10x4xf32, #tpu.memory_space<vmem>>, vector<2x1x1x4xf32>,
    %c0_46 = arith.constant 0 : index
    %c9_47 = arith.constant 9 : index
    %c9_48 = arith.constant 9 : index
    %c0_49 = arith.constant 0 : index
    %83 = vector.load %arg6[%c0_46, %c9_47, %c9_48, %c0_49] : memref<2x10x10x4xf32, #tpu.memory_space<vmem>>, vector<2x1x1x4xf32>
    %84 = vector.shape_cast %83 : vector<2x1x1x4xf32> to vector<2x4xf32>
    %85 = vector.shape_cast %60 : vector<2x4xf32> to vector<2x1x1x4xf32>
    tpu.vector_store %arg6[%c0_46, %c9_47, %c9_48, %c0_49], %85 {strides = array<i32>} : memref<2x10x10x4xf32, #tpu.memory_space<vmem>>, vector<2x1x1x4xf32>,
    %c0_50 = arith.constant 0 : index
    %c0_51 = arith.constant 0 : index
    %c0_52 = arith.constant 0 : index
    %86 = vector.load %arg3[%c0_50, %c0_51, %c0_52] : memref<9x4x8xf32, #tpu.memory_space<vmem>>, vector<9x4x8xf32>
    %cst_53 = arith.constant 0.000000e+00 : f32
    %87 = vector.broadcast %cst_53 : f32 to vector<128x8xf32>
    %c0_54 = arith.constant 0 : index
    %c0_55 = arith.constant 0 : index
    %c0_56 = arith.constant 0 : index
    %c0_57 = arith.constant 0 : index
    %88 = vector.load %arg6[%c0_54, %c0_55, %c0_56, %c0_57] : memref<2x10x10x4xf32, #tpu.memory_space<vmem>>, vector<2x8x8x4xf32>
    %89 = vector.shape_cast %88 : vector<2x8x8x4xf32> to vector<128x4xf32>
    %90 = vector.extract_strided_slice %86 {offsets = [0, 0, 0], sizes = [1, 4, 8], strides = [1, 1, 1]} : vector<9x4x8xf32> to vector<1x4x8xf32>
    %91 = vector.shape_cast %90 : vector<1x4x8xf32> to vector<4x8xf32>
    %cst_58 = arith.constant dense<0.000000e+00> : vector<128x8xf32>
    %92 = tpu.matmul %89, %91, %cst_58 {dimension_numbers = #tpu.dot_dimension_numbers<[1], [0], [0], [1], [0, 0, 1, 1], [], []>} : vector<128x4xf32>, vector<4x8xf32>, vector<128x8xf32> -> vector<128x8xf32>
    %93 = arith.addf %87, %92 : vector<128x8xf32>
    %c0_59 = arith.constant 0 : index
    %c0_60 = arith.constant 0 : index
    %c1_61 = arith.constant 1 : index
    %c0_62 = arith.constant 0 : index
    %94 = vector.load %arg6[%c0_59, %c0_60, %c1_61, %c0_62] : memref<2x10x10x4xf32, #tpu.memory_space<vmem>>, vector<2x8x8x4xf32>
    %95 = vector.shape_cast %94 : vector<2x8x8x4xf32> to vector<128x4xf32>
    %96 = vector.extract_strided_slice %86 {offsets = [1, 0, 0], sizes = [1, 4, 8], strides = [1, 1, 1]} : vector<9x4x8xf32> to vector<1x4x8xf32>
    %97 = vector.shape_cast %96 : vector<1x4x8xf32> to vector<4x8xf32>
    %cst_63 = arith.constant dense<0.000000e+00> : vector<128x8xf32>
    %98 = tpu.matmul %95, %97, %cst_63 {dimension_numbers = #tpu.dot_dimension_numbers<[1], [0], [0], [1], [0, 0, 1, 1], [], []>} : vector<128x4xf32>, vector<4x8xf32>, vector<128x8xf32> -> vector<128x8xf32>
    %99 = arith.addf %93, %98 : vector<128x8xf32>
    %c0_64 = arith.constant 0 : index
    %c0_65 = arith.constant 0 : index
    %c2 = arith.constant 2 : index
    %c0_66 = arith.constant 0 : index
    %100 = vector.load %arg6[%c0_64, %c0_65, %c2, %c0_66] : memref<2x10x10x4xf32, #tpu.memory_space<vmem>>, vector<2x8x8x4xf32>
    %101 = vector.shape_cast %100 : vector<2x8x8x4xf32> to vector<128x4xf32>
    %102 = vector.extract_strided_slice %86 {offsets = [2, 0, 0], sizes = [1, 4, 8], strides = [1, 1, 1]} : vector<9x4x8xf32> to vector<1x4x8xf32>
    %103 = vector.shape_cast %102 : vector<1x4x8xf32> to vector<4x8xf32>
    %cst_67 = arith.constant dense<0.000000e+00> : vector<128x8xf32>
    %104 = tpu.matmul %101, %103, %cst_67 {dimension_numbers = #tpu.dot_dimension_numbers<[1], [0], [0], [1], [0, 0, 1, 1], [], []>} : vector<128x4xf32>, vector<4x8xf32>, vector<128x8xf32> -> vector<128x8xf32>
    %105 = arith.addf %99, %104 : vector<128x8xf32>
    %c0_68 = arith.constant 0 : index
    %c1_69 = arith.constant 1 : index
    %c0_70 = arith.constant 0 : index
    %c0_71 = arith.constant 0 : index
    %106 = vector.load %arg6[%c0_68, %c1_69, %c0_70, %c0_71] : memref<2x10x10x4xf32, #tpu.memory_space<vmem>>, vector<2x8x8x4xf32>
    %107 = vector.shape_cast %106 : vector<2x8x8x4xf32> to vector<128x4xf32>
    %108 = vector.extract_strided_slice %86 {offsets = [3, 0, 0], sizes = [1, 4, 8], strides = [1, 1, 1]} : vector<9x4x8xf32> to vector<1x4x8xf32>
    %109 = vector.shape_cast %108 : vector<1x4x8xf32> to vector<4x8xf32>
    %cst_72 = arith.constant dense<0.000000e+00> : vector<128x8xf32>
    %110 = tpu.matmul %107, %109, %cst_72 {dimension_numbers = #tpu.dot_dimension_numbers<[1], [0], [0], [1], [0, 0, 1, 1], [], []>} : vector<128x4xf32>, vector<4x8xf32>, vector<128x8xf32> -> vector<128x8xf32>
    %111 = arith.addf %105, %110 : vector<128x8xf32>
    %c0_73 = arith.constant 0 : index
    %c1_74 = arith.constant 1 : index
    %c1_75 = arith.constant 1 : index
    %c0_76 = arith.constant 0 : index
    %112 = vector.load %arg6[%c0_73, %c1_74, %c1_75, %c0_76] : memref<2x10x10x4xf32, #tpu.memory_space<vmem>>, vector<2x8x8x4xf32>
    %113 = vector.shape_cast %112 : vector<2x8x8x4xf32> to vector<128x4xf32>
    %114 = vector.extract_strided_slice %86 {offsets = [4, 0, 0], sizes = [1, 4, 8], strides = [1, 1, 1]} : vector<9x4x8xf32> to vector<1x4x8xf32>
    %115 = vector.shape_cast %114 : vector<1x4x8xf32> to vector<4x8xf32>
    %cst_77 = arith.constant dense<0.000000e+00> : vector<128x8xf32>
    %116 = tpu.matmul %113, %115, %cst_77 {dimension_numbers = #tpu.dot_dimension_numbers<[1], [0], [0], [1], [0, 0, 1, 1], [], []>} : vector<128x4xf32>, vector<4x8xf32>, vector<128x8xf32> -> vector<128x8xf32>
    %117 = arith.addf %111, %116 : vector<128x8xf32>
    %c0_78 = arith.constant 0 : index
    %c1_79 = arith.constant 1 : index
    %c2_80 = arith.constant 2 : index
    %c0_81 = arith.constant 0 : index
    %118 = vector.load %arg6[%c0_78, %c1_79, %c2_80, %c0_81] : memref<2x10x10x4xf32, #tpu.memory_space<vmem>>, vector<2x8x8x4xf32>
    %119 = vector.shape_cast %118 : vector<2x8x8x4xf32> to vector<128x4xf32>
    %120 = vector.extract_strided_slice %86 {offsets = [5, 0, 0], sizes = [1, 4, 8], strides = [1, 1, 1]} : vector<9x4x8xf32> to vector<1x4x8xf32>
    %121 = vector.shape_cast %120 : vector<1x4x8xf32> to vector<4x8xf32>
    %cst_82 = arith.constant dense<0.000000e+00> : vector<128x8xf32>
    %122 = tpu.matmul %119, %121, %cst_82 {dimension_numbers = #tpu.dot_dimension_numbers<[1], [0], [0], [1], [0, 0, 1, 1], [], []>} : vector<128x4xf32>, vector<4x8xf32>, vector<128x8xf32> -> vector<128x8xf32>
    %123 = arith.addf %117, %122 : vector<128x8xf32>
    %c0_83 = arith.constant 0 : index
    %c2_84 = arith.constant 2 : index
    %c0_85 = arith.constant 0 : index
    %c0_86 = arith.constant 0 : index
    %124 = vector.load %arg6[%c0_83, %c2_84, %c0_85, %c0_86] : memref<2x10x10x4xf32, #tpu.memory_space<vmem>>, vector<2x8x8x4xf32>
    %125 = vector.shape_cast %124 : vector<2x8x8x4xf32> to vector<128x4xf32>
    %126 = vector.extract_strided_slice %86 {offsets = [6, 0, 0], sizes = [1, 4, 8], strides = [1, 1, 1]} : vector<9x4x8xf32> to vector<1x4x8xf32>
    %127 = vector.shape_cast %126 : vector<1x4x8xf32> to vector<4x8xf32>
    %cst_87 = arith.constant dense<0.000000e+00> : vector<128x8xf32>
    %128 = tpu.matmul %125, %127, %cst_87 {dimension_numbers = #tpu.dot_dimension_numbers<[1], [0], [0], [1], [0, 0, 1, 1], [], []>} : vector<128x4xf32>, vector<4x8xf32>, vector<128x8xf32> -> vector<128x8xf32>
    %129 = arith.addf %123, %128 : vector<128x8xf32>
    %c0_88 = arith.constant 0 : index
    %c2_89 = arith.constant 2 : index
    %c1_90 = arith.constant 1 : index
    %c0_91 = arith.constant 0 : index
    %130 = vector.load %arg6[%c0_88, %c2_89, %c1_90, %c0_91] : memref<2x10x10x4xf32, #tpu.memory_space<vmem>>, vector<2x8x8x4xf32>
    %131 = vector.shape_cast %130 : vector<2x8x8x4xf32> to vector<128x4xf32>
    %132 = vector.extract_strided_slice %86 {offsets = [7, 0, 0], sizes = [1, 4, 8], strides = [1, 1, 1]} : vector<9x4x8xf32> to vector<1x4x8xf32>
    %133 = vector.shape_cast %132 : vector<1x4x8xf32> to vector<4x8xf32>
    %cst_92 = arith.constant dense<0.000000e+00> : vector<128x8xf32>
    %134 = tpu.matmul %131, %133, %cst_92 {dimension_numbers = #tpu.dot_dimension_numbers<[1], [0], [0], [1], [0, 0, 1, 1], [], []>} : vector<128x4xf32>, vector<4x8xf32>, vector<128x8xf32> -> vector<128x8xf32>
    %135 = arith.addf %129, %134 : vector<128x8xf32>
    %c0_93 = arith.constant 0 : index
    %c2_94 = arith.constant 2 : index
    %c2_95 = arith.constant 2 : index
    %c0_96 = arith.constant 0 : index
    %136 = vector.load %arg6[%c0_93, %c2_94, %c2_95, %c0_96] : memref<2x10x10x4xf32, #tpu.memory_space<vmem>>, vector<2x8x8x4xf32>
    %137 = vector.shape_cast %136 : vector<2x8x8x4xf32> to vector<128x4xf32>
    %138 = vector.extract_strided_slice %86 {offsets = [8, 0, 0], sizes = [1, 4, 8], strides = [1, 1, 1]} : vector<9x4x8xf32> to vector<1x4x8xf32>
    %139 = vector.shape_cast %138 : vector<1x4x8xf32> to vector<4x8xf32>
    %cst_97 = arith.constant dense<0.000000e+00> : vector<128x8xf32>
    %140 = tpu.matmul %137, %139, %cst_97 {dimension_numbers = #tpu.dot_dimension_numbers<[1], [0], [0], [1], [0, 0, 1, 1], [], []>} : vector<128x4xf32>, vector<4x8xf32>, vector<128x8xf32> -> vector<128x8xf32>
    %141 = arith.addf %135, %140 : vector<128x8xf32>
    %c0_98 = arith.constant 0 : index
    %c0_99 = arith.constant 0 : index
    %142 = vector.load %arg4[%c0_98, %c0_99] : memref<1x8xf32, #tpu.memory_space<vmem>>, vector<1x8xf32>
    %143 = vector.broadcast %142 : vector<1x8xf32> to vector<128x8xf32>
    %144 = arith.addf %141, %143 : vector<128x8xf32>
    %c0_100 = arith.constant 0 : index
    %c0_101 = arith.constant 0 : index
    %145 = vector.load %arg5[%c0_100, %c0_101] : memref<128x8xf32, #tpu.memory_space<vmem>>, vector<128x8xf32>
    tpu.vector_store %arg5[%c0_100, %c0_101], %144 {strides = array<i32>} : memref<128x8xf32, #tpu.memory_space<vmem>>, vector<128x8xf32>,
    return
  }
  func.func @transform_0(%arg0: i32, %arg1: i32) -> (i32, i32, i32, i32) {
    %c2_i32 = arith.constant 2 : i32
    %0 = arith.muli %arg0, %c2_i32 : i32
    %1 = arith.addi %0, %arg1 : i32
    %c0_i32 = arith.constant 0 : i32
    %c0_i32_0 = arith.constant 0 : i32
    %c0_i32_1 = arith.constant 0 : i32
    %c0_i32_2 = arith.constant 0 : i32
    return %1, %c0_i32, %c0_i32_0, %c0_i32_1 : i32, i32, i32, i32
  }
  func.func @transform_1(%arg0: i32, %arg1: i32) -> (i32, i32, i32) {
    %c0_i32 = arith.constant 0 : i32
    %c0_i32_0 = arith.constant 0 : i32
    %c0_i32_1 = arith.constant 0 : i32
    %c0_i32_2 = arith.constant 0 : i32
    return %c0_i32, %c0_i32_0, %c0_i32_1 : i32, i32, i32
  }
  func.func @transform_2(%arg0: i32, %arg1: i32) -> (i32, i32) {
    %c0_i32 = arith.constant 0 : i32
    %c0_i32_0 = arith.constant 0 : i32
    %c0_i32_1 = arith.constant 0 : i32
    return %c0_i32, %c0_i32_0 : i32, i32
  }
  func.func @transform_3(%arg0: i32, %arg1: i32) -> (i32, i32) {
    %c2_i32 = arith.constant 2 : i32
    %0 = arith.muli %arg0, %c2_i32 : i32
    %1 = arith.addi %0, %arg1 : i32
    %c0_i32 = arith.constant 0 : i32
    %c0_i32_0 = arith.constant 0 : i32
    return %1, %c0_i32 : i32, i32
  }
}

</mosaic_0001>

<bundles_post_ra>
// kernel: tpu_custom_call.1
= control target key start
LH: loop header
LB: loop body
LE: loop exit
PB: predicated region body
PF: predicated region fallthrough
CT: control target
= control target key end

     0   :  { %s3238_s12 = smov 0   ;;  %s3240_s13 = smov 0   ;;  %s4207_s0 = inlined_call_operand.vmem [shape: f32[8,8,8,4], index: 0, kind: input, shape index: {}]   ;;  %s4208_s1 = inlined_call_operand.vmem [shape: f32[9,4,8], index: 1, kind: input, shape index: {}]   ;;  %s4209_s2 = inlined_call_operand.vmem [shape: f32[1,8], index: 2, kind: input, shape index: {}]   ;;  %s4210_s3 = inlined_call_operand.vmem [shape: f32[512,8], index: 3, kind: output, shape index: {}]  }
   0x1   :  { %s3242_s14 = smov 0   ;;  %s3244_s15 = smov 0  }
   0x2   :  { %s3246_s16 = smov 0  }
   0x3 LB: > { %s22_s17 = sadd.s32 1, %s3208_s14  ;;  %s25_s18 = sadd.s32 1, %s3212_s15  ;;  %s3216_s16 = sphi %s3246_s16, %s13_s16   ;;  %s3212_s15 = sphi %s3244_s15, %s4252_s15   ;;  %s3208_s14 = sphi %s3242_s14, %s4251_s14   ;;  %s3204_s13 = sphi %s3240_s13, %s4250_s13   ;;  %s3200_s12 = sphi %s3238_s12, %s4249_s12  }
   0x4   : > { %p23_p0 = scmp.ge.s32.totalorder %s22_s17, 2  ;;  %p2584_p1 = scmp.ge.s32.totalorder %s3216_s16, 1 }
   0x5   : > { %p163_p2 = scmp.lt.s32.totalorder %s3216_s16, 5 }
   0x6   : > { %s4254_s17 = smov (%p23_p0, %s22_s17), 0  ;;  %s4256_s18 = smov (!%p23_p0, %s25_s18), %s3212_s15 }
   0x7   : > { %p164_p3 = pnand %p2584_p1, %p163_p2  ;;  %p27_p4 = scmp.ge.s32.totalorder %s4256_s18, 2 }
   0x9   : > { %s4258_s18 = smov (%p27_p4, %s4256_s18), 0  ;;  %167 = sbr.rel (%p164_p3) target bundleno = 381 (0x17d), region = 32 }
   0xe   : > { %v432_v0 = vld [vmem:[%s4208_s1 + $0x4] sm:$0xf]  ;;  %vm520_vm0 = vcmask 1043456   ;;  %s2585_s21 = sshll.u32 %s3204_s13, 1  ;;  %p229_p5 = scmp.eq.s32.totalorder %s3204_s13, 0  ;;  %vm366_vm1 = vcmask 31744  }
   0xf   : > { %3136 = vmatprep.subr.msk.mxu1 %vm520_vm0, %v432_v0  ;;  %2902 = vmatprep.subr.msk.mxu0 %vm520_vm0, %v432_v0  ;;  %s3280_s22 = sadd.s32 %s3200_s12, %s2585_s21  ;;  %v3285_v1 = vld [vmem:[%s4208_s1] sm:$0xf]  ;;  %v3290_v2 = vld [vmem:[%s4208_s1 + $0x8] sm:$0xf]  ;;  %p233_p7 = scmp.eq.s32.totalorder %s3200_s12, 0  ;;  %vm388_vm2 = vcmask 24576  }
  0x10   : > { %3137 = vmatpush3.msk.msra.mxu1 %vm520_vm0, %v432_v0  ;;  %2903 = vmatpush3.msk.msra.mxu0 %vm520_vm0, %v432_v0  ;;  %s2586_s27 = sshll.u32 %s3280_s22, 1  ;;  %p235_p8 = scmp.eq.s32.totalorder %s3200_s12, 1  ;;  %vm424_vm3 = vcmask 31751   ;;  %vm405_vm4 = vcmask 30726   ;;  %vm2485_vm5 = vcmask 64512  }
  0x11   : > { %p195_p6 = scmp.lt.s32.totalorder %s2586_s27, 7  ;;  %2928 = vmatprep.subr.msk.mxu1 %vm520_vm0, %v3285_v1  ;;  %2954 = vmatprep.subr.msk.mxu0 %vm520_vm0, %v3290_v2  ;;  %p231_p9 = scmp.eq.s32.totalorder %s3204_s13, 1 }
  0x12   : > { %s3300_s28 = scalar_select %p229_p5, 0.0, 1.0 }
  0x13   : > { %s4260_s27 = smov (!%p195_p6, %s2586_s27), 7 }
  0x14   : > { %s239_s29 = smul.f32 0.5, %s3300_s28  ;;  %s2748_s30 = sshll.u32 %s4260_s27, 6 }
  0x15   : > { %s3307_s6 = scalar_lea.vmem %s4207_s0, %s2748_s30 }
  0x16   : > { %v3310_v3 = vld [vmem:[%s3307_s6] sm:$0xff]  ;;  %v3313_v4 = vld [vmem:[%s3307_s6 + $0x8] sm:$0xff]  ;;  %v240_v5 = vstv %s239_s29  ;;  %s3320_s7 = scalar_select %p233_p7, 0.0, 1.0  ;;  %v215_v9 = vld [vmem:[%s3307_s6 + $0x10] sm:$0xff] }
  0x17   : > { %v3316_v6 = vld [vmem:[%s3307_s6 + $0x40] sm:$0xff]  ;;  %v237_v7 = vadd.f32 %v3313_v4, %v3310_v3  ;;  %367 = vst.msk [vmem:[#allocation2 + $0x11] sm:$0xff] %vm366_vm1, %v3310_v3  ;;  %368 = vst.msk [vmem:[#allocation2 + $0x21] sm:$0xff] %vm366_vm1, %v3313_v4  ;;  %v3329_v8 = vld [vmem:[%s3307_s6 + $0x48] sm:$0xff]  ;;  %s3339_s8 = scalar_select %p235_p8, 0.0, 1.0 }
  0x18   : > { %375 = vst.msk [vmem:[#allocation2 + $0xb1] sm:$0xff] %vm366_vm1, %v3316_v6  ;;  %v3335_v10 = vld [vmem:[%s3307_s6 + $0x50] sm:$0xff]  ;;  %v265_v11 = vrot.slane %v3310_v3, 1  ;;  %v238_v12 = vadd.f32 %v3329_v8, %v3316_v6  ;;  %376 = vst.msk [vmem:[#allocation2 + $0xc1] sm:$0xff] %vm366_vm1, %v3329_v8  ;;  %v267_v13 = vrot.slane %v215_v9, 1  ;;  %v216_v15 = vld [vmem:[%s3307_s6 + $0x18] sm:$0xff]  ;;  %s349_s10 = smul.f32 %s3320_s7, %s3300_s28 }
  0x19   : > { %369 = vst.msk [vmem:[#allocation2 + $0x31] sm:$0xff] %vm366_vm1, %v215_v9  ;;  %v275_v14 = vrot.slane %v3335_v10, 1  ;;  %377 = vst.msk [vmem:[#allocation2 + $0xd1] sm:$0xff] %vm366_vm1, %v3335_v10  ;;  %v3352_v16 = vld [vmem:[%s3307_s6 + $0x58] sm:$0xff]  ;;  %v217_v17 = vld [vmem:[%s3307_s6 + $0x20] sm:$0xff]  ;;  %s313_s9 = smul.f32 0.5, %s3320_s7  ;;  %v241_v18 = vmul.f32 %v240_v5, %v237_v7 }
  0x1a   : > { %v268_v19 = vrot.slane %v216_v15, 1  ;;  %370 = vst.msk [vmem:[#allocation2 + $0x41] sm:$0xff] %vm366_vm1, %v216_v15  ;;  %v276_v20 = vrot.slane %v3352_v16, 1  ;;  %378 = vst.msk [vmem:[#allocation2 + $0xe1] sm:$0xff] %vm366_vm1, %v3352_v16  ;;  %v269_v21 = vrot.slane %v217_v17, 1  ;;  %v3362_v22 = vld [vmem:[%s3307_s6 + $0x60] sm:$0xff]  ;;  %v242_v25 = vmul.f32 %v240_v5, %v238_v12  ;;  %s353_s12 = smul.f32 %s3339_s8, %s3300_s28 }
  0x1b   : > { %371 = vst.msk [vmem:[#allocation2 + $0x51] sm:$0xff] %vm366_vm1, %v217_v17  ;;  %v218_v23 = vld [vmem:[%s3307_s6 + $0x28] sm:$0xff]  ;;  %v277_v26 = vrot.slane %v3362_v22, 1  ;;  %379 = vst.msk [vmem:[#allocation2 + $0xf1] sm:$0xff] %vm366_vm1, %v3362_v22  ;;  %v3378_v29 = vld [vmem:[%s3307_s6 + $0x30] sm:$0xff]  ;;  %s331_s11 = smul.f32 0.5, %s3339_s8  ;;  %v3389_v31 = vstv %s313_s9  ;;  %v350_v32 = vstv %s349_s10  ;;  %v297_v33 = vadd.f32 %v265_v11, %v3310_v3 }
  0x1c   : > { %v3366_v24 = vld [vmem:[%s3307_s6 + $0x68] sm:$0xff]  ;;  %v270_v27 = vrot.slane %v218_v23, 1  ;;  %372 = vst.msk [vmem:[#allocation2 + $0x61] sm:$0xff] %vm366_vm1, %v218_v23  ;;  %v3381_v30 = vld [vmem:[%s3307_s6 + $0x70] sm:$0xff]  ;;  %383 = vst.msk [vmem:[#allocation2 + $0x1] sm:$0xff] %vm366_vm1, %v241_v18  ;;  %v266_v34 = vrot.slane %v3313_v4, 1  ;;  %v351_v37 = vmul.f32 %v350_v32, %v3310_v3  ;;  %v299_v39 = vadd.f32 %v267_v13, %v215_v9 }
  0x1d   : > { %v278_v28 = vrot.slane %v3366_v24, 1  ;;  %380 = vst.msk [vmem:[#allocation2 + $0x101] sm:$0xff] %vm366_vm1, %v3366_v24  ;;  %373 = vst.msk [vmem:[#allocation2 + $0x71] sm:$0xff] %vm366_vm1, %v3378_v29  ;;  %v3396_v35 = vld [vmem:[%s3307_s6 + $0x38] sm:$0xff]  ;;  %v3404_v38 = vstv %s331_s11  ;;  %v300_v40 = vadd.f32 %v268_v19, %v216_v15  ;;  %v354_v41 = vstv %s353_s12  ;;  %s3425_s19 = scalar_select %p231_p9, 0.0, 1.0 }
  0x1e   : > { %381 = vst.msk [vmem:[#allocation2 + $0x111] sm:$0xff] %vm366_vm1, %v3381_v30  ;;  %v3399_v36 = vld [vmem:[%s3307_s6 + $0x78] sm:$0xff]  ;;  %384 = vst.msk [vmem:[#allocation2 + $0xa1] sm:$0xff] %vm366_vm1, %v242_v25  ;;  %v315_v42 = vmul.f32 %v3389_v31, %v297_v33  ;;  %v333_v43 = vmul.f32 %v3404_v38, %v297_v33  ;;  %v298_v44 = vadd.f32 %v266_v34, %v3313_v4  ;;  %v271_v54 = vrot.slane %v3378_v29, 1  ;;  %v3454_v9 = vld [vmem:[#allocation2 + $0x21] sm:$0xff] }
  0x1f   : > { %374 = vst.msk [vmem:[#allocation2 + $0x81] sm:$0xff] %vm366_vm1, %v3396_v35  ;;  %382 = vst.msk [vmem:[#allocation2 + $0x121] sm:$0xff] %vm366_vm1, %v3399_v36  ;;  %v355_v45 = vmul.f32 %v354_v41, %v3310_v3  ;;  %v317_v46 = vmul.f32 %v3389_v31, %v299_v39  ;;  %v335_v47 = vmul.f32 %v3404_v38, %v299_v39  ;;  %v3434_v57 = vld [vmem:[#allocation2 + $0x11] sm:$0xff]  ;;  %v273_v60 = vrot.slane %v3316_v6, 1  ;;  %s245_s13 = smul.f32 0.5, %s3425_s19 }
  0x20   : > { %422 = vst.msk [vmem:[#allocation2] sm:$0x1] %vm388_vm2, %v351_v37  ;;  %v318_v48 = vmul.f32 %v3389_v31, %v300_v40  ;;  %389 = vst.msk [vmem:[#allocation2 + $0x10] sm:$0x1] %vm388_vm2, %v315_v42  ;;  %v316_v49 = vmul.f32 %v3389_v31, %v298_v44  ;;  %v334_v50 = vmul.f32 %v3404_v38, %v298_v44  ;;  %v274_v61 = vrot.slane %v3329_v8, 1  ;;  %v3443_v63 = vld [vmem:[#allocation2 + $0xb1] sm:$0xff]  ;;  %s357_s23 = smul.f32 %s3320_s7, %s3425_s19 }
  0x21   : > { %406 = vst.msk [vmem:[#allocation2 + $0x13] sm:$0x40] %vm405_vm4, %v333_v43  ;;  %v336_v51 = vmul.f32 %v3404_v38, %v300_v40  ;;  %v301_v52 = vadd.f32 %v269_v21, %v217_v17  ;;  %408 = vst.msk [vmem:[#allocation2 + $0x33] sm:$0x40] %vm405_vm4, %v335_v47  ;;  %v302_v53 = vadd.f32 %v270_v27, %v218_v23  ;;  %v279_v17 = vrot.slane %v3381_v30, 1  ;;  %v3489_v18 = vld [vmem:[#allocation2 + $0x31] sm:$0xff]  ;;  %s361_s26 = smul.f32 %s3339_s8, %s3425_s19 }
  0x22   : > { %425 = vst.msk [vmem:[#allocation2 + $0x2] sm:$0x80] %vm424_vm3, %v355_v45  ;;  %v352_v55 = vmul.f32 %v350_v32, %v3316_v6  ;;  %v356_v56 = vmul.f32 %v354_v41, %v3316_v6  ;;  %v303_v4 = vadd.f32 %v271_v54, %v3378_v29  ;;  %v307_v5 = vadd.f32 %v275_v14, %v3335_v10  ;;  %v3470_v14 = vld [vmem:[#allocation2 + $0xc1] sm:$0xff]  ;;  %v3494_v19 = vld [vmem:[%s4208_s1 + $0x10] sm:$0xf]  ;;  %s2590_s8 = sshll.u32 %s3280_s22, 4 }
  0x23   : > { %391 = vst.msk [vmem:[#allocation2 + $0x30] sm:$0x1] %vm388_vm2, %v317_v46  ;;  %392 = vst.msk [vmem:[#allocation2 + $0x40] sm:$0x1] %vm388_vm2, %v318_v48  ;;  %v319_v58 = vmul.f32 %v3389_v31, %v301_v52  ;;  %v337_v59 = vmul.f32 %v3404_v38, %v301_v52  ;;  %v456_v62 = vld [vmem:[#allocation2 + $0x1] sm:$0xff]  ;;  %v320_v0 = vmul.f32 %v3389_v31, %v302_v53  ;;  %v272_v23 = vrot.slane %v3396_v35, 1 }
  0x24   : > { %390 = vst.msk [vmem:[#allocation2 + $0x20] sm:$0x1] %vm388_vm2, %v316_v49  ;;  %v338_v3 = vmul.f32 %v3404_v38, %v302_v53  ;;  %423 = vst.msk [vmem:[#allocation2 + $0xa0] sm:$0x1] %vm388_vm2, %v352_v55  ;;  %2904 = vmatprep.mubr.msk.f32.mxu0 %vm366_vm1, %v456_v62  ;;  %v305_v11 = vadd.f32 %v273_v60, %v3316_v6  ;;  %v306_v12 = vadd.f32 %v274_v61, %v3329_v8  ;;  %v3475_v6 = vld [vmem:[%s4208_s1 + $0xc] sm:$0xf] }
  0x25   : > { %407 = vst.msk [vmem:[#allocation2 + $0x23] sm:$0x40] %vm405_vm4, %v334_v50  ;;  %409 = vst.msk [vmem:[#allocation2 + $0x43] sm:$0x40] %vm405_vm4, %v336_v51  ;;  %v464_v7 = vld [vmem:[#allocation2 + $0xa1] sm:$0xff]  ;;  %v308_v13 = vadd.f32 %v276_v20, %v3352_v16  ;;  %v309_v10 = vadd.f32 %v277_v26, %v3362_v22  ;;  %2905 = vmatmul.mubr.msk.f32.vlgmr.msra.gmra.mxu0 %vm366_vm1, %v3434_v57  ;;  %v321_v8 = vmul.f32 %v3389_v31, %v303_v4  ;;  %v3550_v45 = vld [vmem:[#allocation2 + $0x51] sm:$0xff] }
  0x26   : > { %426 = vst.msk [vmem:[#allocation2 + $0xa2] sm:$0x80] %vm424_vm3, %v356_v56  ;;  %2916 = vmatprep.mubr.msk.f32.mxu1 %vm366_vm1, %v464_v7  ;;  %v339_v15 = vmul.f32 %v3404_v38, %v303_v4  ;;  %v325_v16 = vmul.f32 %v3389_v31, %v307_v5  ;;  %2955 = vmatpush3.msk.msra.mxu0 %vm520_vm0, %v3290_v2  ;;  %v3506_v2 = vld [vmem:[#allocation2 + $0xd1] sm:$0xff]  ;;  %v3508_v25 = vld [vmem:[#allocation2 + $0x41] sm:$0xff]  ;;  %v280_v32 = vrot.slane %v3399_v36, 1  ;;  %v246_v40 = vstv %s245_s13  ;;  %p206_p10 = scmp.lt.s32.totalorder %s2590_s8, 63 }
  0x27   : > { %393 = vst.msk [vmem:[#allocation2 + $0x50] sm:$0x1] %vm388_vm2, %v319_v58  ;;  %394 = vst.msk [vmem:[#allocation2 + $0x60] sm:$0x1] %vm388_vm2, %v320_v0  ;;  %2917 = vmatmul.mubr.msk.f32.vlgmr.msra.gmra.mxu1 %vm366_vm1, %v3443_v63  ;;  %v323_v20 = vmul.f32 %v3389_v31, %v305_v11  ;;  %v341_v21 = vmul.f32 %v3404_v38, %v305_v11  ;;  %v324_v22 = vmul.f32 %v3389_v31, %v306_v12  ;;  %v3519_v33 = vld [vmem:[#allocation2 + $0xe1] sm:$0xff]  ;;  %v3564_v48 = vld [vmem:[#allocation2 + $0xf1] sm:$0xff] }
  0x28   : > { %410 = vst.msk [vmem:[#allocation2 + $0x53] sm:$0x40] %vm405_vm4, %v337_v59  ;;  %411 = vst.msk [vmem:[#allocation2 + $0x63] sm:$0x40] %vm405_vm4, %v338_v3  ;;  %2929 = vmatpush3.msk.msra.mxu1 %vm520_vm0, %v3285_v1  ;;  %2907 = vmatprep.mubr.msk.f32.mxu0 %vm366_vm1, %v3454_v9  ;;  %v342_v26 = vmul.f32 %v3404_v38, %v306_v12  ;;  %v343_v27 = vmul.f32 %v3404_v38, %v307_v5  ;;  %v358_v44 = vstv %s357_s23  ;;  %v3566_v49 = vld [vmem:[#allocation2 + $0x61] sm:$0xff]  ;;  %v3593_v62 = vld [vmem:[#allocation2 + $0x71] sm:$0xff] }
  0x29   : > { %395 = vst.msk [vmem:[#allocation2 + $0x70] sm:$0x1] %vm388_vm2, %v321_v8  ;;  %399 = vst.msk [vmem:[#allocation2 + $0xd0] sm:$0x1] %vm388_vm2, %v325_v16  ;;  %v326_v1 = vmul.f32 %v3389_v31, %v308_v13  ;;  %2919 = vmatprep.mubr.msk.f32.mxu1 %vm366_vm1, %v3470_v14  ;;  %2980 = vmatprep.subr.msk.mxu1 %vm520_vm0, %v3475_v6  ;;  %v344_v34 = vmul.f32 %v3404_v38, %v308_v13  ;;  %v362_v47 = vstv %s361_s26  ;;  %v440_v3 = vld [vmem:[#allocation2] sm:$0xff]  ;;  %v3617_v4 = vld [vmem:[#allocation2 + $0x10] sm:$0xff] }
  0x2a   : > { %412 = vst.msk [vmem:[#allocation2 + $0x73] sm:$0x40] %vm405_vm4, %v339_v15  ;;  %414 = vst.msk [vmem:[#allocation2 + $0xb3] sm:$0x40] %vm405_vm4, %v341_v21  ;;  %v327_v37 = vmul.f32 %v3389_v31, %v309_v10  ;;  %v345_v39 = vmul.f32 %v3404_v38, %v309_v10  ;;  %2908 = vmatmul.mubr.msk.f32.gmra.mxu0 %vm366_vm1, %v3489_v18  ;;  %3006 = vmatprep.subr.msk.mxu0 %vm520_vm0, %v3494_v19  ;;  %v3628_v11 = vld [vmem:[%s4208_s1 + $0x14] sm:$0xf] }
  0x2b   : > { %397 = vst.msk [vmem:[#allocation2 + $0xb0] sm:$0x1] %vm388_vm2, %v323_v20  ;;  %398 = vst.msk [vmem:[#allocation2 + $0xc0] sm:$0x1] %vm388_vm2, %v324_v22  ;;  %v310_v41 = vadd.f32 %v278_v28, %v3366_v24  ;;  %v311_v42 = vadd.f32 %v279_v17, %v3381_v30  ;;  %v304_v43 = vadd.f32 %v272_v23, %v3396_v35  ;;  %2920 = vmatmul.mubr.msk.f32.gmra.mxu1 %vm366_vm1, %v3506_v2  ;;  %v3619_v5 = vld [vmem:[#allocation2 + $0x20] sm:$0xff]  ;;  %v3634_v12 = vld [vmem:[#allocation2 + $0x32] sm:$0xff] }
  0x2c   : > { %415 = vst.msk [vmem:[#allocation2 + $0xc3] sm:$0x40] %vm405_vm4, %v342_v26  ;;  %416 = vst.msk [vmem:[#allocation2 + $0xd3] sm:$0x40] %vm405_vm4, %v343_v27  ;;  %2910 = vmatprep.mubr.msk.f32.mxu0 %vm366_vm1, %v3508_v25  ;;  %v312_v24 = vadd.f32 %v280_v32, %v3399_v36  ;;  %v243_v28 = vadd.f32 %v3396_v35, %v3378_v29  ;;  %v359_v46 = vmul.f32 %v358_v44, %v3396_v35  ;;  %v3572_v29 = vld [vmem:[#allocation2 + $0x101] sm:$0xff]  ;;  %v3643_v10 = vld [vmem:[#allocation2 + $0x30] sm:$0xff] }
  0x2d   : > { %400 = vst.msk [vmem:[#allocation2 + $0xe0] sm:$0x1] %vm388_vm2, %v326_v1  ;;  %401 = vst.msk [vmem:[#allocation2 + $0xf0] sm:$0x1] %vm388_vm2, %v327_v37  ;;  %2922 = vmatprep.mubr.msk.f32.mxu1 %vm366_vm1, %v3519_v33  ;;  %v328_v50 = vmul.f32 %v3389_v31, %v310_v41  ;;  %v346_v51 = vmul.f32 %v3404_v38, %v310_v41  ;;  %v329_v52 = vmul.f32 %v3389_v31, %v311_v42  ;;  %v3623_v7 = vld [vmem:[#allocation2 + $0x22] sm:$0xff]  ;;  %s4262_s8 = smov (!%p206_p10, %s2590_s8), 63 }
  0x2e   : > { %417 = vst.msk [vmem:[#allocation2 + $0xe3] sm:$0x40] %vm405_vm4, %v344_v34  ;;  %418 = vst.msk [vmem:[#allocation2 + $0xf3] sm:$0x40] %vm405_vm4, %v345_v39  ;;  %v347_v53 = vmul.f32 %v3404_v38, %v311_v42  ;;  %v322_v54 = vmul.f32 %v3389_v31, %v304_v43  ;;  %v330_v55 = vmul.f32 %v3389_v31, %v312_v24  ;;  %2911 = vmatmul.mubr.msk.f32.gmra.mxu0 %vm366_vm1, %v3550_v45  ;;  %v437_v13 = vld [vmem:[%s4208_s1 + $0x18] sm:$0xf] }
  0x2f   : > { %v340_v56 = vmul.f32 %v3404_v38, %v304_v43  ;;  %v247_v58 = vmul.f32 %v246_v40, %v243_v28  ;;  %427 = vst.msk [vmem:[#allocation2 + $0x90] sm:$0x1] %vm388_vm2, %v359_v46  ;;  %402 = vst.msk [vmem:[#allocation2 + $0x100] sm:$0x1] %vm388_vm2, %v328_v50  ;;  %v348_v59 = vmul.f32 %v3404_v38, %v312_v24  ;;  %2923 = vmatmul.mubr.msk.f32.gmra.mxu1 %vm366_vm1, %v3564_v48  ;;  %v865_v38 = vld [vmem:[#allocation2 + $0x2] sm:$0xff]  ;;  %v3664_v16 = vld [vmem:[#allocation2 + $0x50] sm:$0xff] }
  0x30   : > { %419 = vst.msk [vmem:[#allocation2 + $0x103] sm:$0x40] %vm405_vm4, %v346_v51  ;;  %420 = vst.msk [vmem:[#allocation2 + $0x113] sm:$0x40] %vm405_vm4, %v347_v53  ;;  %v244_v31 = vadd.f32 %v3399_v36, %v3381_v30  ;;  %v360_v60 = vmul.f32 %v358_v44, %v3399_v36  ;;  %v363_v61 = vmul.f32 %v362_v47, %v3396_v35  ;;  %2913 = vmatprep.mubr.msk.f32.mxu0 %vm366_vm1, %v3566_v49  ;;  %v3602_v35 = vld [vmem:[#allocation2 + $0x111] sm:$0xff]  ;;  %v3645_v8 = vld [vmem:[#allocation2 + $0x42] sm:$0xff] }
  0x31   : > { %403 = vst.msk [vmem:[#allocation2 + $0x110] sm:$0x1] %vm388_vm2, %v329_v52  ;;  %396 = vst.msk [vmem:[#allocation2 + $0x80] sm:$0x1] %vm388_vm2, %v322_v54  ;;  %v364_v30 = vmul.f32 %v362_v47, %v3399_v36  ;;  %2925 = vmatprep.mubr.msk.f32.mxu1 %vm366_vm1, %v3572_v29  ;;  %v3614_v36 = vld [vmem:[#allocation2 + $0x12] sm:$0xff]  ;;  %v3649_v15 = vld [vmem:[#allocation2 + $0x40] sm:$0xff] }
  0x32   : > { %404 = vst.msk [vmem:[#allocation2 + $0x120] sm:$0x1] %vm388_vm2, %v330_v55  ;;  %v248_v0 = vmul.f32 %v246_v40, %v244_v31  ;;  %428 = vst.msk [vmem:[#allocation2 + $0x130] sm:$0x1] %vm388_vm2, %v360_v60  ;;  %2914 = vmatmul.mubr.msk.f32.gmra.mxu0 %vm366_vm1, %v3593_v62  ;;  %v3666_v17 = vld [vmem:[#allocation2 + $0x62] sm:$0xff]  ;;  %v3676_v20 = vld [vmem:[#allocation2 + $0x72] sm:$0xff] }
  0x33   : > { %413 = vst.msk [vmem:[#allocation2 + $0x83] sm:$0x40] %vm405_vm4, %v340_v56  ;;  %421 = vst.msk [vmem:[#allocation2 + $0x123] sm:$0x40] %vm405_vm4, %v348_v59  ;;  %2926 = vmatmul.mubr.msk.f32.gmra.mxu1 %vm366_vm1, %v3602_v35  ;;  %2956 = vmatprep.mubr.msk.f32.mxu0 %vm366_vm1, %v865_v38  ;;  %v3680_v21 = vld [vmem:[#allocation2 + $0x70] sm:$0xff]  ;;  %v873_v22 = vld [vmem:[#allocation2 + $0xa2] sm:$0xff] }
  0x34   : > { %386 = vst.msk [vmem:[#allocation2 + $0x91] sm:$0xff] %vm366_vm1, %v247_v58  ;;  %387 = vst.msk [vmem:[#allocation2 + $0x131] sm:$0xff] %vm366_vm1, %v248_v0  ;;  %2930 = vmatprep.mubr.msk.f32.mxu1 %vm366_vm1, %v440_v3  ;;  %v448_v23 = vld [vmem:[#allocation2 + $0xa0] sm:$0xff]  ;;  %v3687_v26 = vld [vmem:[#allocation2 + $0xb2] sm:$0xff]  ;;  %s2591_s22 = sshll.u32 %s4262_s8, 3 }
  0x35   : > { %429 = vst.msk [vmem:[#allocation2 + $0x92] sm:$0x80] %vm424_vm3, %v363_v61  ;;  %430 = vst.msk [vmem:[#allocation2 + $0x132] sm:$0x80] %vm424_vm3, %v364_v30  ;;  %v449_v27 = vld [vmem:[#allocation2 + $0xb0] sm:$0xff]  ;;  %v3690_v1 = vld [vmem:[#allocation2 + $0xc2] sm:$0xff]  ;;  %s4096_s19 = scalar_lea.vmem %s4210_s3, %s2591_s22 }
  0x36   : > { %2957 = vmatmul.mubr.msk.f32.vlgmr.msra.gmra.mxu0 %vm366_vm1, %v3614_v36  ;;  %v3692_v32 = vld [vmem:[#allocation2 + $0xc0] sm:$0xff]  ;;  %v3699_v34 = vld [vmem:[#allocation2 + $0xd2] sm:$0xff]  ;;  %v438_v46 = vld [vmem:[%s4208_s1 + $0x1c] sm:$0xf] }
  0x37   : > { %2931 = vmatmul.mubr.msk.f32.vlgmr.msra.gmra.mxu1 %vm366_vm1, %v3617_v4  ;;  %3007 = vmatpush3.msk.msra.mxu0 %vm520_vm0, %v3494_v19  ;;  %v3668_v19 = vld [vmem:[#allocation2 + $0x60] sm:$0xff]  ;;  %v3703_v37 = vld [vmem:[#allocation2 + $0xd0] sm:$0xff] }
  0x38   : > { %2981 = vmatpush3.msk.msra.mxu1 %vm520_vm0, %v3475_v6  ;;  %2933 = vmatprep.mubr.msk.f32.mxu1 %vm366_vm1, %v3619_v5  ;;  %v3660_v6 = vld [vmem:[#allocation2 + $0x52] sm:$0xff]  ;;  %v3705_v39 = vld [vmem:[#allocation2 + $0xe2] sm:$0xff] }
  0x39   : > { %2959 = vmatprep.mubr.msk.f32.mxu0 %vm366_vm1, %v3623_v7  ;;  %3032 = vmatprep.subr.msk.mxu1 %vm520_vm0, %v3628_v11  ;;  %v3707_v40 = vld [vmem:[#allocation2 + $0xe0] sm:$0xff]  ;;  %v3715_v41 = vld [vmem:[#allocation2 + $0xf2] sm:$0xff] }
  0x3a   : > { %2960 = vmatmul.mubr.msk.f32.gmra.mxu0 %vm366_vm1, %v3634_v12  ;;  %3058 = vmatprep.subr.msk.mxu0 %vm520_vm0, %v437_v13  ;;  %v3719_v42 = vld [vmem:[#allocation2 + $0xf0] sm:$0xff]  ;;  %v3721_v43 = vld [vmem:[#allocation2 + $0x102] sm:$0xff] }
  0x3b   : > { %2934 = vmatmul.mubr.msk.f32.gmra.mxu1 %vm366_vm1, %v3643_v10  ;;  %2962 = vmatprep.mubr.msk.f32.mxu0 %vm366_vm1, %v3645_v8  ;;  %v3723_v44 = vld [vmem:[#allocation2 + $0x100] sm:$0xff]  ;;  %v3731_v24 = vld [vmem:[#allocation2 + $0x112] sm:$0xff] }
  0x3c   : > { %2936 = vmatprep.mubr.msk.f32.mxu1 %vm366_vm1, %v3649_v15  ;;  %v3735_v28 = vld [vmem:[#allocation2 + $0x110] sm:$0xff]  ;;  %v439_v47 = vld [vmem:[%s4208_s1 + $0x20] sm:$0xf] }
  0x3d   : > { %v1100_v50 = vld [vmem:[#allocation2 + $0x80] sm:$0xff]  ;;  %v1785_v52 = vld [vmem:[#allocation2 + $0x90] sm:$0xff] }
  0x3e   : > { %2963 = vmatmul.mubr.msk.f32.gmra.mxu0 %vm366_vm1, %v3660_v6  ;;  %v1108_v51 = vld [vmem:[#allocation2 + $0x120] sm:$0xff]  ;;  %v1793_v54 = vld [vmem:[#allocation2 + $0x130] sm:$0xff] }
  0x3f   : > { %2937 = vmatmul.mubr.msk.f32.gmra.mxu1 %vm366_vm1, %v3664_v16  ;;  %2965 = vmatprep.mubr.msk.f32.mxu0 %vm366_vm1, %v3666_v17  ;;  %v1556_v53 = vld [vmem:[#allocation2 + $0x82] sm:$0xff] }
  0x40   : > { %2939 = vmatprep.mubr.msk.f32.mxu1 %vm366_vm1, %v3668_v19  ;;  %v1564_v55 = vld [vmem:[#allocation2 + $0x122] sm:$0xff] }
  0x42   : > { %2966 = vmatmul.mubr.msk.f32.gmra.mxu0 %vm366_vm1, %v3676_v20 }
  0x43   : > { %2940 = vmatmul.mubr.msk.f32.gmra.mxu1 %vm366_vm1, %v3680_v21  ;;  %2968 = vmatprep.mubr.msk.f32.mxu0 %vm366_vm1, %v873_v22 }
  0x44   : > { %2942 = vmatprep.mubr.msk.f32.mxu1 %vm366_vm1, %v448_v23 }
  0x46   : > { %2969 = vmatmul.mubr.msk.f32.gmra.mxu0 %vm366_vm1, %v3687_v26 }
  0x47   : > { %2943 = vmatmul.mubr.msk.f32.gmra.mxu1 %vm366_vm1, %v449_v27  ;;  %2971 = vmatprep.mubr.msk.f32.mxu0 %vm366_vm1, %v3690_v1 }
  0x48   : > { %2945 = vmatprep.mubr.msk.f32.mxu1 %vm366_vm1, %v3692_v32 }
  0x4a   : > { %2972 = vmatmul.mubr.msk.f32.gmra.mxu0 %vm366_vm1, %v3699_v34 }
  0x4b   : > { %2946 = vmatmul.mubr.msk.f32.gmra.mxu1 %vm366_vm1, %v3703_v37  ;;  %2974 = vmatprep.mubr.msk.f32.mxu0 %vm366_vm1, %v3705_v39 }
  0x4c   : > { %2948 = vmatprep.mubr.msk.f32.mxu1 %vm366_vm1, %v3707_v40 }
  0x4e   : > { %2975 = vmatmul.mubr.msk.f32.gmra.mxu0 %vm366_vm1, %v3715_v41 }
  0x4f   : > { %2949 = vmatmul.mubr.msk.f32.gmra.mxu1 %vm366_vm1, %v3719_v42  ;;  %2977 = vmatprep.mubr.msk.f32.mxu0 %vm366_vm1, %v3721_v43 }
  0x50   : > { %2951 = vmatprep.mubr.msk.f32.mxu1 %vm366_vm1, %v3723_v44 }
  0x52   : > { %2978 = vmatmul.mubr.msk.f32.gmra.mxu0 %vm366_vm1, %v3731_v24 }
  0x53   : > { %2952 = vmatmul.mubr.msk.f32.gmra.mxu1 %vm366_vm1, %v3735_v28  ;;  %3008 = vmatprep.mubr.msk.f32.mxu0 %vm366_vm1, %v3434_v57  ;;  %v3778_v57 = vld [vmem:[#allocation2 + $0x81] sm:$0xff] }
  0x54   : > { %2982 = vmatprep.mubr.msk.f32.mxu1 %vm366_vm1, %v3617_v4 }
  0x56   : > { %3009 = vmatmul.mubr.msk.f32.vlgmr.msra.gmra.mxu0 %vm366_vm1, %v3454_v9 }
  0x57   : > { %2983 = vmatmul.mubr.msk.f32.vlgmr.msra.gmra.mxu1 %vm366_vm1, %v3619_v5  ;;  %3059 = vmatpush3.msk.msra.mxu0 %vm520_vm0, %v437_v13 }
  0x58   : > { %3033 = vmatpush3.msk.msra.mxu1 %vm520_vm0, %v3628_v11  ;;  %2985 = vmatprep.mubr.msk.f32.mxu1 %vm366_vm1, %v3643_v10 }
  0x59   : > { %3011 = vmatprep.mubr.msk.f32.mxu0 %vm366_vm1, %v3489_v18  ;;  %3084 = vmatprep.subr.msk.mxu1 %vm520_vm0, %v438_v46 }
  0x5a   : > { %3012 = vmatmul.mubr.msk.f32.gmra.mxu0 %vm366_vm1, %v3508_v25  ;;  %3110 = vmatprep.subr.msk.mxu0 %vm520_vm0, %v439_v47 }
  0x5b   : > { %2986 = vmatmul.mubr.msk.f32.gmra.mxu1 %vm366_vm1, %v3649_v15  ;;  %3014 = vmatprep.mubr.msk.f32.mxu0 %vm366_vm1, %v3550_v45 }
  0x5c   : > { %2988 = vmatprep.mubr.msk.f32.mxu1 %vm366_vm1, %v3664_v16 }
  0x5e   : > { %3015 = vmatmul.mubr.msk.f32.gmra.mxu0 %vm366_vm1, %v3566_v49 }
  0x5f   : > { %2989 = vmatmul.mubr.msk.f32.gmra.mxu1 %vm366_vm1, %v3668_v19  ;;  %3017 = vmatprep.mubr.msk.f32.mxu0 %vm366_vm1, %v3593_v62 }
  0x60   : > { %2991 = vmatprep.mubr.msk.f32.mxu1 %vm366_vm1, %v3680_v21 }
  0x62   : > { %3018 = vmatmul.mubr.msk.f32.gmra.mxu0 %vm366_vm1, %v3778_v57 }
  0x63   : > { %2992 = vmatmul.mubr.msk.f32.gmra.mxu1 %vm366_vm1, %v1100_v50  ;;  %3020 = vmatprep.mubr.msk.f32.mxu0 %vm366_vm1, %v3443_v63  ;;  %v3810_v63 = vld [vmem:[#allocation2 + $0x121] sm:$0xff] }
  0x64   : > { %2994 = vmatprep.mubr.msk.f32.mxu1 %vm366_vm1, %v449_v27 }
  0x66   : > { %3021 = vmatmul.mubr.msk.f32.gmra.mxu0 %vm366_vm1, %v3470_v14 }
  0x67   : > { %2995 = vmatmul.mubr.msk.f32.gmra.mxu1 %vm366_vm1, %v3692_v32  ;;  %3023 = vmatprep.mubr.msk.f32.mxu0 %vm366_vm1, %v3506_v2 }
  0x68   : > { %2997 = vmatprep.mubr.msk.f32.mxu1 %vm366_vm1, %v3703_v37 }
  0x6a   : > { %3024 = vmatmul.mubr.msk.f32.gmra.mxu0 %vm366_vm1, %v3519_v33 }
  0x6b   : > { %2998 = vmatmul.mubr.msk.f32.gmra.mxu1 %vm366_vm1, %v3707_v40  ;;  %3026 = vmatprep.mubr.msk.f32.mxu0 %vm366_vm1, %v3564_v48 }
  0x6c   : > { %3000 = vmatprep.mubr.msk.f32.mxu1 %vm366_vm1, %v3719_v42 }
  0x6e   : > { %3027 = vmatmul.mubr.msk.f32.gmra.mxu0 %vm366_vm1, %v3572_v29 }
  0x6f   : > { %3001 = vmatmul.mubr.msk.f32.gmra.mxu1 %vm366_vm1, %v3723_v44  ;;  %3029 = vmatprep.mubr.msk.f32.mxu0 %vm366_vm1, %v3602_v35 }
  0x70   : > { %3003 = vmatprep.mubr.msk.f32.mxu1 %vm366_vm1, %v3735_v28 }
  0x72   : > { %3030 = vmatmul.mubr.msk.f32.gmra.mxu0 %vm366_vm1, %v3810_v63 }
  0x73   : > { %3004 = vmatmul.mubr.msk.f32.gmra.mxu1 %vm366_vm1, %v1108_v51  ;;  %3060 = vmatprep.mubr.msk.f32.mxu0 %vm366_vm1, %v3619_v5 }
  0x74   : > { %3034 = vmatprep.mubr.msk.f32.mxu1 %vm366_vm1, %v3614_v36 }
  0x76   : > { %3061 = vmatmul.mubr.msk.f32.vlgmr.msra.gmra.mxu0 %vm366_vm1, %v3643_v10 }
  0x77   : > { %3035 = vmatmul.mubr.msk.f32.vlgmr.msra.gmra.mxu1 %vm366_vm1, %v3623_v7  ;;  %3111 = vmatpush3.msk.msra.mxu0 %vm520_vm0, %v439_v47 }
  0x78   : > { %3085 = vmatpush3.msk.msra.mxu1 %vm520_vm0, %v438_v46  ;;  %3037 = vmatprep.mubr.msk.f32.mxu1 %vm366_vm1, %v3634_v12 }
  0x79   : > { %3063 = vmatprep.mubr.msk.f32.mxu0 %vm366_vm1, %v3649_v15 }
  0x7a   : > { %3064 = vmatmul.mubr.msk.f32.gmra.mxu0 %vm366_vm1, %v3664_v16 }
  0x7b   : > { %3038 = vmatmul.mubr.msk.f32.gmra.mxu1 %vm366_vm1, %v3645_v8  ;;  %3066 = vmatprep.mubr.msk.f32.mxu0 %vm366_vm1, %v3668_v19 }
  0x7c   : > { %3040 = vmatprep.mubr.msk.f32.mxu1 %vm366_vm1, %v3660_v6 }
  0x7e   : > { %3067 = vmatmul.mubr.msk.f32.gmra.mxu0 %vm366_vm1, %v3680_v21 }
  0x7f   : > { %3041 = vmatmul.mubr.msk.f32.gmra.mxu1 %vm366_vm1, %v3666_v17  ;;  %3069 = vmatprep.mubr.msk.f32.mxu0 %vm366_vm1, %v1100_v50 }
  0x80   : > { %3043 = vmatprep.mubr.msk.f32.mxu1 %vm366_vm1, %v3676_v20 }
  0x82   : > { %3070 = vmatmul.mubr.msk.f32.gmra.mxu0 %vm366_vm1, %v1785_v52 }
  0x83   : > { %3044 = vmatmul.mubr.msk.f32.gmra.mxu1 %vm366_vm1, %v1556_v53  ;;  %3072 = vmatprep.mubr.msk.f32.mxu0 %vm366_vm1, %v3692_v32 }
  0x84   : > { %3046 = vmatprep.mubr.msk.f32.mxu1 %vm366_vm1, %v3687_v26 }
  0x86   : > { %3073 = vmatmul.mubr.msk.f32.gmra.mxu0 %vm366_vm1, %v3703_v37 }
  0x87   : > { %3047 = vmatmul.mubr.msk.f32.gmra.mxu1 %vm366_vm1, %v3690_v1  ;;  %3075 = vmatprep.mubr.msk.f32.mxu0 %vm366_vm1, %v3707_v40 }
  0x88   : > { %3049 = vmatprep.mubr.msk.f32.mxu1 %vm366_vm1, %v3699_v34 }
  0x8a   : > { %3076 = vmatmul.mubr.msk.f32.gmra.mxu0 %vm366_vm1, %v3719_v42 }
  0x8b   : > { %3050 = vmatmul.mubr.msk.f32.gmra.mxu1 %vm366_vm1, %v3705_v39  ;;  %3078 = vmatprep.mubr.msk.f32.mxu0 %vm366_vm1, %v3723_v44 }
  0x8c   : > { %3052 = vmatprep.mubr.msk.f32.mxu1 %vm366_vm1, %v3715_v41 }
  0x8e   : > { %3079 = vmatmul.mubr.msk.f32.gmra.mxu0 %vm366_vm1, %v3735_v28 }
  0x8f   : > { %3053 = vmatmul.mubr.msk.f32.gmra.mxu1 %vm366_vm1, %v3721_v43  ;;  %3081 = vmatprep.mubr.msk.f32.mxu0 %vm366_vm1, %v1108_v51 }
  0x90   : > { %3055 = vmatprep.mubr.msk.f32.mxu1 %vm366_vm1, %v3731_v24 }
  0x92   : > { %3082 = vmatmul.mubr.msk.f32.gmra.mxu0 %vm366_vm1, %v1793_v54 }
  0x93   : > { %3056 = vmatmul.mubr.msk.f32.gmra.mxu1 %vm366_vm1, %v1564_v55  ;;  %3112 = vmatprep.mubr.msk.f32.mxu0 %vm366_vm1, %v3623_v7 }
  0x94   : > { %3086 = vmatprep.mubr.msk.f32.mxu1 %vm366_vm1, %v3454_v9  ;;  %v2241_v9 = vld [vmem:[#allocation2 + $0x92] sm:$0xff] }
  0x96   : > { %3113 = vmatmul.mubr.msk.f32.vlgmr.msra.gmra.mxu0 %vm366_vm1, %v3634_v12 }
  0x97   : > { %3087 = vmatmul.mubr.msk.f32.vlgmr.msra.gmra.mxu1 %vm366_vm1, %v3489_v18  ;;  %3115 = vmatprep.mubr.msk.f32.mxu0 %vm366_vm1, %v3645_v8  ;;  %v2013_v18 = vld [vmem:[#allocation2 + $0x91] sm:$0xff] }
  0x98   : > { %3089 = vmatprep.mubr.msk.f32.mxu1 %vm366_vm1, %v3508_v25 }
  0x9a   : > { %3116 = vmatmul.mubr.msk.f32.gmra.mxu0 %vm366_vm1, %v3660_v6 }
  0x9b   : > { %3090 = vmatmul.mubr.msk.f32.gmra.mxu1 %vm366_vm1, %v3550_v45  ;;  %3118 = vmatprep.mubr.msk.f32.mxu0 %vm366_vm1, %v3666_v17 }
  0x9c   : > { %3092 = vmatprep.mubr.msk.f32.mxu1 %vm366_vm1, %v3566_v49 }
  0x9e   : > { %3119 = vmatmul.mubr.msk.f32.gmra.mxu0 %vm366_vm1, %v3676_v20 }
  0x9f   : > { %3093 = vmatmul.mubr.msk.f32.gmra.mxu1 %vm366_vm1, %v3593_v62  ;;  %3121 = vmatprep.mubr.msk.f32.mxu0 %vm366_vm1, %v1556_v53 }
  0xa0   : > { %3095 = vmatprep.mubr.msk.f32.mxu1 %vm366_vm1, %v3778_v57 }
  0xa2   : > { %3122 = vmatmul.mubr.msk.f32.gmra.mxu0 %vm366_vm1, %v2241_v9 }
  0xa3   : > { %3096 = vmatmul.mubr.msk.f32.gmra.mxu1 %vm366_vm1, %v2013_v18  ;;  %3124 = vmatprep.mubr.msk.f32.mxu0 %vm366_vm1, %v3690_v1 }
  0xa4   : > { %3098 = vmatprep.mubr.msk.f32.mxu1 %vm366_vm1, %v3470_v14  ;;  %v2249_v14 = vld [vmem:[#allocation2 + $0x132] sm:$0xff] }
  0xa6   : > { %3125 = vmatmul.mubr.msk.f32.gmra.mxu0 %vm366_vm1, %v3699_v34 }
  0xa7   : > { %3099 = vmatmul.mubr.msk.f32.gmra.mxu1 %vm366_vm1, %v3506_v2  ;;  %3127 = vmatprep.mubr.msk.f32.mxu0 %vm366_vm1, %v3705_v39  ;;  %v2021_v2 = vld [vmem:[#allocation2 + $0x131] sm:$0xff] }
  0xa8   : > { %3101 = vmatprep.mubr.msk.f32.mxu1 %vm366_vm1, %v3519_v33 }
  0xaa   : > { %3128 = vmatmul.mubr.msk.f32.gmra.mxu0 %vm366_vm1, %v3715_v41 }
  0xab   : > { %3102 = vmatmul.mubr.msk.f32.gmra.mxu1 %vm366_vm1, %v3564_v48  ;;  %3130 = vmatprep.mubr.msk.f32.mxu0 %vm366_vm1, %v3721_v43 }
  0xac   : > { %3104 = vmatprep.mubr.msk.f32.mxu1 %vm366_vm1, %v3572_v29 }
  0xae   : > { %3131 = vmatmul.mubr.msk.f32.gmra.mxu0 %vm366_vm1, %v3731_v24 }
  0xaf   : > { %3105 = vmatmul.mubr.msk.f32.gmra.mxu1 %vm366_vm1, %v3602_v35  ;;  %3133 = vmatprep.mubr.msk.f32.mxu0 %vm366_vm1, %v1564_v55 }
  0xb0   : > { %3107 = vmatprep.mubr.msk.f32.mxu1 %vm366_vm1, %v3810_v63 }
  0xb2   : > { %3134 = vmatmul.mubr.msk.f32.gmra.mxu0 %vm366_vm1, %v2249_v14 }
  0xb3   : > { %3108 = vmatmul.mubr.msk.f32.gmra.mxu1 %vm366_vm1, %v2021_v2 }
  0xe5   : > { %v2906_v25 = vpop.f32.mrf.mxu0 }
  0xe7   : > { %v2918_v33 = vpop.f32.mrf.mxu1  ;;  %v590_v45 = vpop.f32.mrf.mxu0 }
  0xe9   : > { %v630_v48 = vpop.f32.mrf.mxu1 }
  0xea   : > { %v2909_v49 = vpop.f32.mrf.mxu0 }
  0xeb   : > { %v2921_v29 = vpop.f32.mrf.mxu1 }
  0xec   : > { %v600_v56 = vpop.f32.mrf.mxu0 }
  0xed   : > { %v640_v58 = vpop.f32.mrf.mxu1 }
  0xee   : > { %v2912_v59 = vpop.f32.mrf.mxu0 }
  0xef   : > { %v2924_v31 = vpop.f32.mrf.mxu1 }
  0xf0   : > { %v610_v60 = vpop.f32.mrf.mxu0 }
  0xf1   : > { %v650_v61 = vpop.f32.mrf.mxu1 }
  0xf2   : > { %v2915_v62 = vpop.f32.mrf.mxu0 }
  0xf3   : > { %v2927_v30 = vpop.f32.mrf.mxu1 }
  0xf4   : > { %v620_v35 = vpop.f32.mrf.mxu0 }
  0xf5   : > { %v3935_v38 = vpop.f32.mrf.mxu1 }
  0xf6   : > { %v2958_v0 = vpop.f32.mrf.mxu0 }
  0xf7   : > { %v2932_v3 = vpop.f32.mrf.mxu1 }
  0xf8   : > { %v792_v36 = vadd.f32 %v2932_v3, %v2906_v25  ;;  %v998_v4 = vpop.f32.mrf.mxu0 }
  0xf9   : > { %v786_v5 = vpop.f32.mrf.mxu1 }
  0xfa   : > { %v3937_v7 = vadd.f32 %v2958_v0, %v792_v36  ;;  %v787_v11 = vadd.f32 %v786_v5, %v590_v45  ;;  %v2961_v12 = vpop.f32.mrf.mxu0 }
  0xfb   : > { %v2935_v13 = vpop.f32.mrf.mxu1 }
  0xfc   : > { %v3939_v10 = vadd.f32 %v998_v4, %v787_v11  ;;  %v802_v8 = vadd.f32 %v2935_v13, %v2909_v49  ;;  %v1008_v15 = vpop.f32.mrf.mxu0 }
  0xfd   : > { %v796_v6 = vpop.f32.mrf.mxu1 }
  0xfe   : > { %v3941_v16 = vadd.f32 %v2961_v12, %v802_v8  ;;  %v797_v17 = vadd.f32 %v796_v6, %v600_v56  ;;  %v2964_v19 = vpop.f32.mrf.mxu0 }
  0xff   : > { %v2938_v20 = vpop.f32.mrf.mxu1 }
 0x100   : > { %v3943_v21 = vadd.f32 %v1008_v15, %v797_v17  ;;  %v812_v22 = vadd.f32 %v2938_v20, %v2912_v59  ;;  %v1018_v23 = vpop.f32.mrf.mxu0 }
 0x101   : > { %v806_v26 = vpop.f32.mrf.mxu1 }
 0x102   : > { %v3945_v27 = vadd.f32 %v2964_v19, %v812_v22  ;;  %v807_v1 = vadd.f32 %v806_v26, %v610_v60  ;;  %v2967_v32 = vpop.f32.mrf.mxu0 }
 0x103   : > { %v2941_v34 = vpop.f32.mrf.mxu1 }
 0x104   : > { %v3947_v37 = vadd.f32 %v1018_v23, %v807_v1  ;;  %v822_v39 = vadd.f32 %v2941_v34, %v2915_v62  ;;  %v1028_v40 = vpop.f32.mrf.mxu0 }
 0x105   : > { %v816_v41 = vpop.f32.mrf.mxu1 }
 0x106   : > { %v3949_v42 = vadd.f32 %v2967_v32, %v822_v39  ;;  %v817_v43 = vadd.f32 %v816_v41, %v620_v35  ;;  %v2970_v44 = vpop.f32.mrf.mxu0 }
 0x107   : > { %v2944_v24 = vpop.f32.mrf.mxu1 }
 0x108   : > { %v3951_v28 = vadd.f32 %v1028_v40, %v817_v43  ;;  %v832_v46 = vadd.f32 %v2944_v24, %v2918_v33  ;;  %v1038_v47 = vpop.f32.mrf.mxu0 }
 0x109   : > { %v826_v57 = vpop.f32.mrf.mxu1 }
 0x10a   : > { %v3953_v50 = vadd.f32 %v2970_v44, %v832_v46  ;;  %v827_v63 = vadd.f32 %v826_v57, %v630_v48  ;;  %v2973_v51 = vpop.f32.mrf.mxu0 }
 0x10b   : > { %v2947_v52 = vpop.f32.mrf.mxu1 }
 0x10c   : > { %v3955_v53 = vadd.f32 %v1038_v47, %v827_v63  ;;  %v842_v54 = vadd.f32 %v2947_v52, %v2921_v29  ;;  %v1048_v55 = vpop.f32.mrf.mxu0 }
 0x10d   : > { %v836_v9 = vpop.f32.mrf.mxu1 }
 0x10e   : > { %v3957_v18 = vadd.f32 %v2973_v51, %v842_v54  ;;  %v837_v14 = vadd.f32 %v836_v9, %v640_v58  ;;  %v2976_v2 = vpop.f32.mrf.mxu0 }
 0x10f   : > { %v2950_v25 = vpop.f32.mrf.mxu1 }
 0x110   : > { %v3959_v45 = vadd.f32 %v1048_v55, %v837_v14  ;;  %v852_v33 = vadd.f32 %v2950_v25, %v2924_v31  ;;  %v1058_v49 = vpop.f32.mrf.mxu0 }
 0x111   : > { %v846_v56 = vpop.f32.mrf.mxu1 }
 0x112   : > { %v3961_v59 = vadd.f32 %v2976_v2, %v852_v33  ;;  %v847_v48 = vadd.f32 %v846_v56, %v650_v61  ;;  %v2979_v60 = vpop.f32.mrf.mxu0 }
 0x113   : > { %v2953_v62 = vpop.f32.mrf.mxu1 }
 0x114   : > { %v3963_v35 = vadd.f32 %v1058_v49, %v847_v48  ;;  %v862_v29 = vadd.f32 %v2953_v62, %v2927_v30  ;;  %v1068_v0 = vpop.f32.mrf.mxu0 }
 0x115   : > { %v856_v3 = vpop.f32.mrf.mxu1 }
 0x116   : > { %4211 = vst [vmem:[#allocation3_spill] sm:$0xff] %v3963_v35  ;;  %v3965_v36 = vadd.f32 %v2979_v60, %v862_v29  ;;  %v857_v58 = vadd.f32 %v856_v3, %v3935_v38  ;;  %v3010_v4 = vpop.f32.mrf.mxu0 }
 0x117   : > { %v2984_v5 = vpop.f32.mrf.mxu1 }
 0x118   : > { %4212 = vst [vmem:[#allocation4_spill] sm:$0xff] %v3965_v36  ;;  %v3968_v11 = vadd.f32 %v1068_v0, %v857_v58  ;;  %v3970_v31 = vpop.f32.mrf.mxu0  ;;  %v1306_v36 = vadd.f32 %v2984_v5, %v3937_v7 }
 0x119   : > { %v1226_v12 = vpop.f32.mrf.mxu1 }
 0x11a   : > { %4213 = vst [vmem:[#allocation5_spill] sm:$0xff] %v3968_v11  ;;  %v3972_v13 = vpop.f32.mrf.mxu0  ;;  %v1305_v35 = vadd.f32 %v1226_v12, %v3939_v10 }
 0x11b   : > { %v2987_v61 = vpop.f32.mrf.mxu1 }
 0x11c   : > { %v3974_v8 = vpop.f32.mrf.mxu0  ;;  %v1533_v7 = vadd.f32 %v3970_v31, %v1305_v35 }
 0x11d   : > { %v1236_v15 = vpop.f32.mrf.mxu1 }
 0x11e   : > { %v3976_v30 = vpop.f32.mrf.mxu0  ;;  %v1307_v5 = vadd.f32 %v1236_v15, %v3943_v21 }
 0x11f   : > { %v2990_v6 = vpop.f32.mrf.mxu1 }
 0x120   : > { %v3978_v17 = vpop.f32.mrf.mxu0  ;;  %v1310_v10 = vadd.f32 %v2990_v6, %v3945_v27  ;;  %v1535_v21 = vadd.f32 %v3974_v8, %v1307_v5 }
 0x121   : > { %v3980_v19 = vpop.f32.mrf.mxu1 }
 0x122   : > { %v3982_v38 = vpop.f32.mrf.mxu0  ;;  %v1538_v27 = vadd.f32 %v3976_v30, %v1310_v10 }
 0x123   : > { %v3984_v20 = vpop.f32.mrf.mxu1 }
 0x124   : > { %v3986_v22 = vpop.f32.mrf.mxu0  ;;  %v1312_v6 = vadd.f32 %v3984_v20, %v3949_v42 }
 0x125   : > { %v3988_v23 = vpop.f32.mrf.mxu1 }
 0x126   : > { %v3990_v26 = vpop.f32.mrf.mxu0 }
 0x127   : > { %v3992_v1 = vpop.f32.mrf.mxu1 }
 0x128   : > { %v3994_v32 = vpop.f32.mrf.mxu0 }
 0x129   : > { %v3996_v34 = vpop.f32.mrf.mxu1 }
 0x12a   : > { %v3998_v39 = vpop.f32.mrf.mxu0 }
 0x12b   : > { %v4000_v40 = vpop.f32.mrf.mxu1 }
 0x12c   : > { %v4002_v41 = vpop.f32.mrf.mxu0 }
 0x12d   : > { %4214 = vst [vmem:[#allocation6_spill] sm:$0xff] %v4002_v41  ;;  %v4004_v43 = vpop.f32.mrf.mxu1 }
 0x12e   : > { %v4006_v44 = vpop.f32.mrf.mxu0 }
 0x12f   : > { %4215 = vst [vmem:[#allocation7_spill] sm:$0xff] %v4006_v44  ;;  %v4008_v24 = vpop.f32.mrf.mxu1 }
 0x130   : > { %v4010_v46 = vpop.f32.mrf.mxu0 }
 0x131   : > { %4216 = vst [vmem:[#allocation8_spill] sm:$0xff] %v4010_v46  ;;  %v4012_v47 = vpop.f32.mrf.mxu1 }
 0x132   : > { %4217 = vst [vmem:[#allocation9_spill] sm:$0xff] %v4012_v47  ;;  %v4014_v57 = vpop.f32.mrf.mxu0 }
 0x133   : > { %4218 = vst [vmem:[#allocation10_spill] sm:$0xff] %v4014_v57  ;;  %v4016_v63 = vpop.f32.mrf.mxu1 }
 0x134   : > { %4219 = vst [vmem:[#allocation11_spill] sm:$0xff] %v4016_v63  ;;  %v4018_v51 = vpop.f32.mrf.mxu0 }
 0x135   : > { %4220 = vst [vmem:[#allocation12_spill] sm:$0xff] %v4018_v51  ;;  %v4020_v52 = vpop.f32.mrf.mxu1 }
 0x136   : > { %4221 = vst [vmem:[#allocation13_spill] sm:$0xff] %v4020_v52  ;;  %v3062_v54 = vpop.f32.mrf.mxu0 }
 0x137   : > { %v3036_v55 = vpop.f32.mrf.mxu1 }
 0x138   : > { %v1911_v9 = vpop.f32.mrf.mxu0 }
 0x139   : > { %v1682_v14 = vpop.f32.mrf.mxu1 }
 0x13a   : > { %v3065_v2 = vpop.f32.mrf.mxu0 }
 0x13b   : > { %v3039_v25 = vpop.f32.mrf.mxu1 }
 0x13c   : > { %v4022_v33 = vpop.f32.mrf.mxu0 }
 0x13d   : > { %v1692_v49 = vpop.f32.mrf.mxu1 }
 0x13e   : > { %v4024_v56 = vpop.f32.mrf.mxu0 }
 0x13f   : > { %v3042_v48 = vpop.f32.mrf.mxu1 }
 0x140   : > { %v4026_v60 = vpop.f32.mrf.mxu0  ;;  %v1766_v8 = vadd.f32 %v3042_v48, %v1538_v27 }
 0x141   : > { %v1702_v62 = vpop.f32.mrf.mxu1 }
 0x142   : > { %v4028_v29 = vpop.f32.mrf.mxu0 }
 0x143   : > { %v4030_v0 = vpop.f32.mrf.mxu1 }
 0x144   : > { %v4032_v3 = vpop.f32.mrf.mxu0 }
 0x145   : > { %4222 = vst [vmem:[#allocation14_spill] sm:$0xff] %v4032_v3  ;;  %v4034_v58 = vpop.f32.mrf.mxu1  ;;  %v1308_v3 = vadd.f32 %v2987_v61, %v3941_v16  ;;  %v1309_v61 = vadd.f32 %v3980_v19, %v3947_v37  ;;  %v1311_v19 = vadd.f32 %v3988_v23, %v3951_v28 }
 0x146   : > { %v4036_v51 = vpop.f32.mrf.mxu0 }
 0x147   : > { %4223 = vst [vmem:[#allocation15_spill] sm:$0xff] %v4036_v51  ;;  %v4038_v57 = vpop.f32.mrf.mxu1  ;;  %v1537_v37 = vadd.f32 %v3978_v17, %v1309_v61 }
 0x148   : > { %v4040_v52 = vpop.f32.mrf.mxu0 }
 0x149   : > { %4224 = vst [vmem:[#allocation16_spill] sm:$0xff] %v4040_v52  ;;  %v4042_v11 = vpop.f32.mrf.mxu1  ;;  %v1534_v52 = vadd.f32 %v3010_v4, %v1306_v36  ;;  %v1536_v36 = vadd.f32 %v3972_v13, %v1308_v3  ;;  %v1761_v4 = vadd.f32 %v1682_v14, %v1533_v7  ;;  %v1765_v17 = vadd.f32 %v1702_v62, %v1537_v37 }
 0x14a   : > { %4225 = vst [vmem:[#allocation17_spill] sm:$0xff] %v4042_v11  ;;  %v4044_v46 = vpop.f32.mrf.mxu0 }
 0x14b   : > { %4226 = vst [vmem:[#allocation18_spill] sm:$0xff] %v4044_v46  ;;  %v4046_v63 = vpop.f32.mrf.mxu1  ;;  %v1764_v31 = vadd.f32 %v3039_v25, %v1536_v36  ;;  %v1540_v25 = vadd.f32 %v3982_v38, %v1312_v6  ;;  %v1539_v38 = vadd.f32 %v3986_v22, %v1311_v19  ;;  %v1316_v22 = vadd.f32 %v4000_v40, %v3957_v18 }
 0x14c   : > { %v4049_v44 = vpop.f32.mrf.mxu0 }
 0x14d   : > { %4227 = vst [vmem:[#allocation19_spill] sm:$0xff] %v4049_v44  ;;  %v4051_v47 = vpop.f32.mrf.mxu1  ;;  %v1762_v44 = vadd.f32 %v3036_v55, %v1534_v52  ;;  %v1990_v52 = vadd.f32 %v1911_v9, %v1761_v4  ;;  %v1763_v55 = vadd.f32 %v1692_v49, %v1535_v21  ;;  %v1314_v49 = vadd.f32 %v3992_v1, %v3953_v50 }
 0x14e   : > { %4228 = vst [vmem:[#allocation20_spill] sm:$0xff] %v4051_v47  ;;  %v4055_v51 = vpop.f32.mrf.mxu0  ;;  %v1313_v50 = vadd.f32 %v3996_v34, %v3955_v53  ;;  %v1995_v1 = vadd.f32 %v4024_v56, %v1766_v8  ;;  %v1768_v10 = vadd.f32 %v4030_v0, %v1540_v25  ;;  %v1994_v53 = vadd.f32 %v4026_v60, %v1765_v17 }
 0x14f   : > { %v4057_v41 = vpop.f32.mrf.mxu1  ;;  %v1991_v35 = vadd.f32 %v3062_v54, %v1762_v44  ;;  %v4088_v44 = vld [vmem:[%s4209_s2] ss:$0 sm:$0xff]  ;;  %v1993_v54 = vadd.f32 %v3065_v2, %v1764_v31  ;;  %v1992_v23 = vadd.f32 %v4022_v33, %v1763_v55  ;;  %v1542_v21 = vadd.f32 %v3990_v26, %v1314_v49 }
 0x150   : > { %v4060_v11 = vpop.f32.mrf.mxu0  ;;  %v1767_v56 = vadd.f32 %v4034_v58, %v1539_v38  ;;  %v1541_v27 = vadd.f32 %v3994_v32, %v1313_v50  ;;  %v1315_v26 = vadd.f32 %v4004_v43, %v3959_v45  ;;  %v1997_v60 = vadd.f32 %v4028_v29, %v1768_v10  ;;  %v4239_v50 = vld [vmem:[#allocation16_spill] sm:$0xff] }
 0x151   : > { %4229 = vst [vmem:[#allocation21_spill] sm:$0xff] %v4060_v11  ;;  %v4062_v46 = vpop.f32.mrf.mxu1  ;;  %v1770_v18 = vadd.f32 %v4038_v57, %v1542_v21  ;;  %v1544_v55 = vadd.f32 %v3998_v39, %v1316_v22  ;;  %v1318_v32 = vadd.f32 %v4008_v24, %v3961_v59  ;;  %v4231_v57 = vld [vmem:[#allocation14_spill] sm:$0xff]  ;;  %v4234_v39 = vld [vmem:[#allocation9_spill] sm:$0xff]  ;;  %v4241_v21 = vld [vmem:[#allocation8_spill] sm:$0xff] }
 0x152   : > { %v4066_v47 = vpop.f32.mrf.mxu0 }
 0x153   : > { %v4069_v12 = vpop.f32.mrf.mxu1  ;;  %v1772_v25 = vadd.f32 %v4046_v63, %v1544_v55 }
 0x154   : > { %v4072_v16 = vpop.f32.mrf.mxu0 }
 0x155   : > { %v4076_v11 = vpop.f32.mrf.mxu1  ;;  %v4240_v10 = vld [vmem:[#allocation20_spill] sm:$0xff] }
 0x156   : > { %v3114_v15 = vpop.f32.mrf.mxu0 }
 0x157   : > { %v3088_v13 = vpop.f32.mrf.mxu1 }
 0x158   : > { %v2219_v14 = vadd.f32 %v3088_v13, %v1991_v35  ;;  %v2367_v3 = vpop.f32.mrf.mxu0 }
 0x159   : > { %v2139_v30 = vpop.f32.mrf.mxu1 }
 0x15a   : > { %v2447_v42 = vadd.f32 %v3114_v15, %v2219_v14  ;;  %v2218_v20 = vadd.f32 %v2139_v30, %v1990_v52  ;;  %v3117_v9 = vpop.f32.mrf.mxu0  ;;  %v4230_v14 = vld [vmem:[#allocation17_spill] sm:$0xff]  ;;  %v4232_v30 = vld [vmem:[#allocation6_spill] sm:$0xff] }
 0x15b   : > { %v3091_v28 = vpop.f32.mrf.mxu1  ;;  %v1769_v45 = vadd.f32 %v4230_v14, %v1541_v27 }
 0x15c   : > { %v2470_v2 = vadd.f32 %v4088_v44, %v2447_v42  ;;  %v2446_v48 = vadd.f32 %v2367_v3, %v2218_v20  ;;  %v2221_v7 = vadd.f32 %v3091_v28, %v1993_v54  ;;  %v2377_v5 = vpop.f32.mrf.mxu0  ;;  %v1996_v3 = vadd.f32 %v4231_v57, %v1767_v56  ;;  %v4233_v42 = vld [vmem:[#allocation3_spill] sm:$0xff] }
 0x15d   : > { %v2149_v62 = vpop.f32.mrf.mxu1  ;;  %v1543_v54 = vadd.f32 %v4232_v30, %v1315_v26  ;;  %v1317_v20 = vadd.f32 %v4234_v39, %v4233_v42 }
 0x15e   : > { %2487 = vst.msk [vmem:[%s4096_s19 + $0x8] sm:$0xff] %vm2485_vm5, %v2470_v2  ;;  %v2469_v33 = vadd.f32 %v4088_v44, %v2446_v48  ;;  %v2449_v36 = vadd.f32 %v3117_v9, %v2221_v7  ;;  %v2220_v4 = vadd.f32 %v2149_v62, %v1992_v23  ;;  %v3120_v61 = vpop.f32.mrf.mxu0  ;;  %v4235_v9 = vld [vmem:[#allocation15_spill] sm:$0xff]  ;;  %v4237_v7 = vld [vmem:[#allocation4_spill] sm:$0xff] }
 0x15f   : > { %v3094_v34 = vpop.f32.mrf.mxu1  ;;  %v1999_v59 = vadd.f32 %v4235_v9, %v1770_v18  ;;  %v4236_v2 = vld [vmem:[#allocation7_spill] sm:$0xff]  ;;  %v1545_v22 = vadd.f32 %v4241_v21, %v1317_v20 }
 0x160   : > { %2486 = vst.msk [vmem:[%s4096_s19] sm:$0xff] %vm2485_vm5, %v2469_v33  ;;  %v2472_v0 = vadd.f32 %v4088_v44, %v2449_v36  ;;  %v2448_v35 = vadd.f32 %v2377_v5, %v2220_v4  ;;  %v2223_v31 = vadd.f32 %v3094_v34, %v1995_v1  ;;  %v2387_v15 = vpop.f32.mrf.mxu0  ;;  %v1546_v48 = vadd.f32 %v4236_v2, %v1318_v32  ;;  %v4238_v5 = vld [vmem:[#allocation11_spill] sm:$0xff]  ;;  %v4243_v34 = vld [vmem:[#allocation13_spill] sm:$0xff] }
 0x161   : > { %v2159_v40 = vpop.f32.mrf.mxu1  ;;  %v1320_v38 = vadd.f32 %v4238_v5, %v4237_v7  ;;  %v1998_v1 = vadd.f32 %v4239_v50, %v1769_v45  ;;  %v1771_v33 = vadd.f32 %v4240_v10, %v1543_v54  ;;  %v4248_v54 = vld [vmem:[#allocation21_spill] sm:$0xff] }
 0x162   : > { %2489 = vst.msk [vmem:[%s4096_s19 + $0x18] sm:$0xff] %vm2485_vm5, %v2472_v0  ;;  %v2471_v58 = vadd.f32 %v4088_v44, %v2448_v35  ;;  %v2451_v6 = vadd.f32 %v3120_v61, %v2223_v31  ;;  %v2222_v13 = vadd.f32 %v2159_v40, %v1994_v53  ;;  %v3123_v52 = vpop.f32.mrf.mxu0  ;;  %v4242_v53 = vld [vmem:[#allocation5_spill] sm:$0xff]  ;;  %v1774_v0 = vadd.f32 %v4057_v41, %v1546_v48  ;;  %v4244_v31 = vld [vmem:[#allocation18_spill] sm:$0xff] }
 0x163   : > { %v3097_v43 = vpop.f32.mrf.mxu1  ;;  %v1319_v56 = vadd.f32 %v4243_v34, %v4242_v53 }
 0x164   : > { %2488 = vst.msk [vmem:[%s4096_s19 + $0x10] sm:$0xff] %vm2485_vm5, %v2471_v58  ;;  %v2474_v29 = vadd.f32 %v4088_v44, %v2451_v6  ;;  %v2450_v37 = vadd.f32 %v2387_v15, %v2222_v13  ;;  %v2225_v19 = vadd.f32 %v3097_v43, %v1997_v60  ;;  %v2397_v8 = vpop.f32.mrf.mxu0  ;;  %v2001_v15 = vadd.f32 %v4244_v31, %v1772_v25  ;;  %v4245_v60 = vld [vmem:[#allocation10_spill] sm:$0xff]  ;;  %v4247_v43 = vld [vmem:[#allocation12_spill] sm:$0xff] }
 0x165   : > { %v2169_v24 = vpop.f32.mrf.mxu1  ;;  %v1548_v58 = vadd.f32 %v4245_v60, %v1320_v38  ;;  %v1773_v6 = vadd.f32 %v4062_v46, %v1545_v22  ;;  %v1547_v57 = vadd.f32 %v4247_v43, %v1319_v56 }
 0x166   : > { %2491 = vst.msk [vmem:[%s4096_s19 + $0x28] sm:$0xff] %vm2485_vm5, %v2474_v29  ;;  %v2473_v49 = vadd.f32 %v4088_v44, %v2450_v37  ;;  %v2453_v17 = vadd.f32 %v3123_v52, %v2225_v19  ;;  %v2224_v28 = vadd.f32 %v2169_v24, %v1996_v3  ;;  %v3126_v23 = vpop.f32.mrf.mxu0  ;;  %v4246_v52 = vld [vmem:[#allocation19_spill] sm:$0xff]  ;;  %v2003_v3 = vadd.f32 %v4055_v51, %v1774_v0 }
 0x167   : > { %v3100_v62 = vpop.f32.mrf.mxu1  ;;  %v2000_v55 = vadd.f32 %v4246_v52, %v1771_v33  ;;  %v1776_v37 = vadd.f32 %v4069_v12, %v1548_v58  ;;  %v2002_v42 = vadd.f32 %v4248_v54, %v1773_v6  ;;  %v1775_v20 = vadd.f32 %v4076_v11, %v1547_v57 }
 0x168   : > { %2490 = vst.msk [vmem:[%s4096_s19 + $0x20] sm:$0xff] %vm2485_vm5, %v2473_v49  ;;  %v2476_v63 = vadd.f32 %v4088_v44, %v2453_v17  ;;  %v2452_v36 = vadd.f32 %v2397_v8, %v2224_v28  ;;  %v2227_v4 = vadd.f32 %v3100_v62, %v1999_v59  ;;  %v2407_v61 = vpop.f32.mrf.mxu0 }
 0x169   : > { %v2179_v35 = vpop.f32.mrf.mxu1  ;;  %v2005_v25 = vadd.f32 %v4066_v47, %v1776_v37  ;;  %v2004_v2 = vadd.f32 %v4072_v16, %v1775_v20 }
 0x16a   : > { %2493 = vst.msk [vmem:[%s4096_s19 + $0x38] sm:$0xff] %vm2485_vm5, %v2476_v63  ;;  %v2475_v27 = vadd.f32 %v4088_v44, %v2452_v36  ;;  %v2455_v26 = vadd.f32 %v3126_v23, %v2227_v4  ;;  %v2226_v18 = vadd.f32 %v2179_v35, %v1998_v1  ;;  %v3129_v40 = vpop.f32.mrf.mxu0 }
 0x16b   : > { %v3103_v13 = vpop.f32.mrf.mxu1 }
 0x16c   : > { %2492 = vst.msk [vmem:[%s4096_s19 + $0x30] sm:$0xff] %vm2485_vm5, %v2475_v27  ;;  %v2478_v41 = vadd.f32 %v4088_v44, %v2455_v26  ;;  %v2454_v32 = vadd.f32 %v2407_v61, %v2226_v18  ;;  %v2229_v14 = vadd.f32 %v3103_v13, %v2001_v15  ;;  %v2417_v45 = vpop.f32.mrf.mxu0 }
 0x16d   : > { %v2189_v29 = vpop.f32.mrf.mxu1 }
 0x16e   : > { %2495 = vst.msk [vmem:[%s4096_s19 + $0x48] sm:$0xff] %vm2485_vm5, %v2478_v41  ;;  %v2477_v46 = vadd.f32 %v4088_v44, %v2454_v32  ;;  %v2457_v19 = vadd.f32 %v3129_v40, %v2229_v14  ;;  %v2228_v8 = vadd.f32 %v2189_v29, %v2000_v55  ;;  %v3132_v30 = vpop.f32.mrf.mxu0 }
 0x16f   : > { %v3106_v39 = vpop.f32.mrf.mxu1 }
 0x170   : > { %2494 = vst.msk [vmem:[%s4096_s19 + $0x40] sm:$0xff] %vm2485_vm5, %v2477_v46  ;;  %v2480_v51 = vadd.f32 %v4088_v44, %v2457_v19  ;;  %v2456_v9 = vadd.f32 %v2417_v45, %v2228_v8  ;;  %v2231_v12 = vadd.f32 %v3106_v39, %v2003_v3  ;;  %v2427_v59 = vpop.f32.mrf.mxu0 }
 0x171   : > { %v2199_v24 = vpop.f32.mrf.mxu1 }
 0x172   : > { %2497 = vst.msk [vmem:[%s4096_s19 + $0x58] sm:$0xff] %vm2485_vm5, %v2480_v51  ;;  %v2479_v49 = vadd.f32 %v4088_v44, %v2456_v9  ;;  %v2459_v17 = vadd.f32 %v3132_v30, %v2231_v12  ;;  %v2230_v28 = vadd.f32 %v2199_v24, %v2002_v42  ;;  %v3135_v11 = vpop.f32.mrf.mxu0 }
 0x173   : > { %v3109_v23 = vpop.f32.mrf.mxu1 }
 0x174   : > { %2496 = vst.msk [vmem:[%s4096_s19 + $0x50] sm:$0xff] %vm2485_vm5, %v2479_v49  ;;  %v2482_v48 = vadd.f32 %v4088_v44, %v2459_v17  ;;  %v2458_v7 = vadd.f32 %v2427_v59, %v2230_v28  ;;  %v2233_v5 = vadd.f32 %v3109_v23, %v2005_v25  ;;  %v2437_v62 = vpop.f32.mrf.mxu0 }
 0x175   : > { %v2209_v47 = vpop.f32.mrf.mxu1 }
 0x176   : > { %2499 = vst.msk [vmem:[%s4096_s19 + $0x68] sm:$0xff] %vm2485_vm5, %v2482_v48  ;;  %v2481_v38 = vadd.f32 %v4088_v44, %v2458_v7  ;;  %v2461_v50 = vadd.f32 %v3135_v11, %v2233_v5  ;;  %v2232_v1 = vadd.f32 %v2209_v47, %v2004_v2 }
 0x178   : > { %2498 = vst.msk [vmem:[%s4096_s19 + $0x60] sm:$0xff] %vm2485_vm5, %v2481_v38  ;;  %v2484_v10 = vadd.f32 %v4088_v44, %v2461_v50  ;;  %v2460_v16 = vadd.f32 %v2437_v62, %v2232_v1 }
 0x17a   : > { %2501 = vst.msk [vmem:[%s4096_s19 + $0x78] sm:$0xff] %vm2485_vm5, %v2484_v10  ;;  %v2483_v33 = vadd.f32 %v4088_v44, %v2460_v16 }
 0x17c   : > { %2500 = vst.msk [vmem:[%s4096_s19 + $0x70] sm:$0xff] %vm2485_vm5, %v2483_v33 }
 0x17d PF: > { %s13_s16 = sadd.s32 1, %s3216_s16   ;;  %s4249_s12 = smov %s3208_s14 }
 0x17e   : > { %p10_p11 = scmp.ge.s32.totalorder %s13_s16, 6   ;;  %s4250_s13 = smov %s3212_s15 }
 0x17f   : > { %s4251_s14 = smov %s4254_s17  ;;  %s4252_s15 = smov %s4258_s18 }
 0x180   :  { %12 = sbr.rel (!%p10_p11) target bundleno = 3 (0x3), region = 65 }

</bundles_post_ra>
